<compile_context>
chip_gen: v7x
topology: tpu7x:2x2x1
jax: 0.10.0
libtpu: 0.0.40
codegen_flags: <defaults>
</compile_context>

<pallas_src>
import functools

import jax
import jax.numpy as jnp
from jax.experimental import pallas as pl
from jax.experimental.pallas import tpu as pltpu

# ---------------- model config (down-scaled, same structure as Camera_Pose defaults) -
INPUT_DIM = 16     # module default 40
EMBED_DIM = 32     # module default 256
NHEAD = 4          # module default 8
NUM_LAYER = 2      # module default 3
FFN_DIM = 64       # nn.TransformerEncoderLayer default 2048
SEQ = 8
BATCH = 2
LN_EPS = 1e-5
HEAD_DIM = EMBED_DIM // NHEAD


# ---------------------------------- fused kernel -------------------------------------
def _layer_norm(y, gamma, beta):
    mu = jnp.mean(y, axis=-1, keepdims=True)
    var = jnp.mean((y - mu) ** 2, axis=-1, keepdims=True)
    return (y - mu) * jax.lax.rsqrt(var + LN_EPS) * gamma + beta


def _camera_pose_kernel(x_ref, emb_w_ref, emb_b_ref,
                        wqkv_ref, bqkv_ref, wo_ref, bo_ref,
                        g1_ref, be1_ref, w1_ref, b1_ref,
                        w2_ref, b2_ref, g2_ref, be2_ref,
                        o_ref, *, batch, seq, nhead, num_layer):
    # x_ref: (B*T, D_in) rows ordered as b*T + t.  All weights are full VMEM blocks;
    # per-layer weights are stacked along a leading NUM_LAYER axis.
    e = emb_w_ref.shape[1]
    hd = e // nhead
    scale = 1.0 / float(hd) ** 0.5

    # ---- linear embedding: all B*T rows in one matmul --------------------------------
    act = jnp.dot(x_ref[...], emb_w_ref[...],
                  preferred_element_type=jnp.float32) + emb_b_ref[...]   # (B*T, E)

    # ---- encoder layers (post-norm), activations stay resident in VMEM ---------------
    for li in range(num_layer):                       # static unroll
        wqkv, bqkv = wqkv_ref[li], bqkv_ref[li]
        wo, bo = wo_ref[li], bo_ref[li]
        g1, be1 = g1_ref[li], be1_ref[li]
        w1, b1 = w1_ref[li], b1_ref[li]
        w2, b2 = w2_ref[li], b2_ref[li]
        g2, be2 = g2_ref[li], be2_ref[li]

        # fused QKV projection for the whole (B*T, E) slab
        qkv = jnp.dot(act, wqkv, preferred_element_type=jnp.float32) + bqkv  # (B*T, 3E)
        q = qkv[:, 0 * e:1 * e]
        k = qkv[:, 1 * e:2 * e]
        v = qkv[:, 2 * e:3 * e]

        # multi-head self-attention: static per-batch / per-head 2-D slices + 2-D dots
        batch_outs = []
        for b in range(batch):                        # static unroll (B=2)
            r0, r1 = b * seq, (b + 1) * seq
            head_outs = []
            for h in range(nhead):                    # static unroll (H=4)
                c0, c1 = h * hd, (h + 1) * hd
                qh = q[r0:r1, c0:c1]                  # (T, hd)
                kh = k[r0:r1, c0:c1]
                vh = v[r0:r1, c0:c1]
                # scores = qh @ kh.T  (contract last dims, no explicit transpose)
                s = jax.lax.dot_general(
                    qh, kh, (((1,), (1,)), ((), ())),
                    preferred_element_type=jnp.float32) * scale           # (T, T)
                s = s - jnp.max(s, axis=-1, keepdims=True)
                p = jnp.exp(s)
                p = p * pl.reciprocal(jnp.sum(p, axis=-1, keepdims=True),
                                      approx=True)
                head_outs.append(
                    jnp.dot(p, vh, preferred_element_type=jnp.float32))   # (T, hd)
            batch_outs.append(jnp.concatenate(head_outs, axis=-1))        # (T, E)
        attn = jnp.concatenate(batch_outs, axis=0)                        # (B*T, E)

        attn = jnp.dot(attn, wo, preferred_element_type=jnp.float32) + bo

        # residual + LayerNorm 1 (dropout is identity at eval)
        y = _layer_norm(act + attn, g1, be1)

        # feed-forward: Linear -> ReLU -> Linear
        h1 = jnp.dot(y, w1, preferred_element_type=jnp.float32) + b1
        h1 = jnp.maximum(h1, 0.0)
        f = jnp.dot(h1, w2, preferred_element_type=jnp.float32) + b2

        # residual + LayerNorm 2
        act = _layer_norm(y + f, g2, be2)

    # ---- only the last time step per batch element goes back to HBM ------------------
    last = jnp.concatenate(
        [act[b * seq + seq - 1: b * seq + seq, :] for b in range(batch)], axis=0)
    o_ref[...] = last.astype(o_ref.dtype)                                 # (B, E)


# ---------------------------------- wrapper -------------------------------------------
def _full_spec(shape):
    # whole array as one block, constant across the (single-step) grid
    return pl.BlockSpec(shape, lambda i: (0,) * len(shape))


@jax.jit
def camera_pose_forward(input_tensor, params):
    # input_tensor: (B, input_dim, T) -- PyTorch's pre-permute layout
    B, Din, T = input_tensor.shape
    E = params['emb_w'].shape[1]
    # permute(0,2,1) then flatten batch & time into rows (b*T + t) -- tiny glue op
    x = jnp.transpose(input_tensor, (0, 2, 1)).reshape(B * T, Din)

    args = (x, params['emb_w'], params['emb_b'],
            params['wqkv'], params['bqkv'], params['wo'], params['bo'],
            params['g1'], params['be1'], params['w1'], params['b1'],
            params['w2'], params['b2'], params['g2'], params['be2'])
    in_specs = [_full_spec(a.shape) for a in args]

    kernel = functools.partial(_camera_pose_kernel, batch=B, seq=T,
                               nhead=NHEAD, num_layer=NUM_LAYER)
    return pl.pallas_call(
        kernel,
        out_shape=jax.ShapeDtypeStruct((B, E), jnp.float32),
        grid=(1,),
        in_specs=in_specs,
        out_specs=_full_spec((B, E)),
        compiler_params=pltpu.CompilerParams(
            dimension_semantics=("arbitrary",)),
    )(*args)


# ---------------------------------- parameter init ------------------------------------
def init_params(key):
    def nrm(k, shape, scale=0.02):
        return (scale * jax.random.normal(k, shape)).astype(jnp.float32)

    keys = jax.random.split(key, 2 + NUM_LAYER)
    E, F = EMBED_DIM, FFN_DIM
    wqkv, bqkv, wo, bo = [], [], [], []
    g1, be1, w1, b1, w2, b2, g2, be2 = [], [], [], [], [], [], [], []
    for li in range(NUM_LAYER):
        lk = jax.random.split(keys[2 + li], 6)
        wqkv.append(nrm(lk[0], (E, 3 * E)))            # fused Wq|Wk|Wv, stored (in, out)
        bqkv.append(nrm(lk[1], (1, 3 * E)))
        wo.append(nrm(lk[2], (E, E)))
        bo.append(jnp.zeros((1, E), jnp.float32))
        g1.append(jnp.ones((1, E), jnp.float32))
        be1.append(jnp.zeros((1, E), jnp.float32))
        w1.append(nrm(lk[3], (E, F)))
        b1.append(jnp.zeros((1, F), jnp.float32))
        w2.append(nrm(lk[4], (F, E)))
        b2.append(jnp.zeros((1, E), jnp.float32))
        g2.append(jnp.ones((1, E), jnp.float32))
        be2.append(jnp.zeros((1, E), jnp.float32))

    stack = lambda xs: jnp.stack(xs, axis=0)           # stacked along NUM_LAYER axis
    return {
        'emb_w': nrm(keys[0], (INPUT_DIM, E)),
        'emb_b': nrm(keys[1], (1, E)),
        'wqkv': stack(wqkv), 'bqkv': stack(bqkv),
        'wo': stack(wo), 'bo': stack(bo),
        'g1': stack(g1), 'be1': stack(be1),
        'w1': stack(w1), 'b1': stack(b1),
        'w2': stack(w2), 'b2': stack(b2),
        'g2': stack(g2), 'be2': stack(be2),
    }


if __name__ == "__main__":
    key = jax.random.PRNGKey(0)
    k_in, k_par = jax.random.split(key)
    input_tensor = jax.random.normal(k_in, (BATCH, INPUT_DIM, SEQ), dtype=jnp.float32)
    params = init_params(k_par)

    out = camera_pose_forward(input_tensor, params)
    jax.block_until_ready(out)
    assert out.shape == (BATCH, EMBED_DIM)
    print("KERNEL_OK")
</pallas_src>

<mosaic_0001>
module attributes {stable_mosaic.version = 11 : i64} {
  func.func @_camera_pose_kernel(%arg0: i32, %arg1: memref<16x16xf32, #tpu.memory_space<vmem>>, %arg2: memref<16x32xf32, #tpu.memory_space<vmem>>, %arg3: memref<1x32xf32, #tpu.memory_space<vmem>>, %arg4: memref<2x32x96xf32, #tpu.memory_space<vmem>>, %arg5: memref<2x1x96xf32, #tpu.memory_space<vmem>>, %arg6: memref<2x32x32xf32, #tpu.memory_space<vmem>>, %arg7: memref<2x1x32xf32, #tpu.memory_space<vmem>>, %arg8: memref<2x1x32xf32, #tpu.memory_space<vmem>>, %arg9: memref<2x1x32xf32, #tpu.memory_space<vmem>>, %arg10: memref<2x32x64xf32, #tpu.memory_space<vmem>>, %arg11: memref<2x1x64xf32, #tpu.memory_space<vmem>>, %arg12: memref<2x64x32xf32, #tpu.memory_space<vmem>>, %arg13: memref<2x1x32xf32, #tpu.memory_space<vmem>>, %arg14: memref<2x1x32xf32, #tpu.memory_space<vmem>>, %arg15: memref<2x1x32xf32, #tpu.memory_space<vmem>>, %arg16: memref<2x32xf32, #tpu.memory_space<vmem>>) attributes {dimension_semantics = [#tpu.dimension_semantics<arbitrary>], iteration_bounds = array<i64: 1>, scalar_prefetch = 0 : i64, scratch_operands = 0 : i64, tpu.core_type = #tpu.core_type<tc>, window_params = [{pipeline_mode = #tpu.pipeline_mode<synchronous>, transform_indices = @transform_0, window_bounds = array<i64: 16, 16>}, {pipeline_mode = #tpu.pipeline_mode<synchronous>, transform_indices = @transform_1, window_bounds = array<i64: 16, 32>}, {pipeline_mode = #tpu.pipeline_mode<synchronous>, transform_indices = @transform_2, window_bounds = array<i64: 1, 32>}, {pipeline_mode = #tpu.pipeline_mode<synchronous>, transform_indices = @transform_3, window_bounds = array<i64: 2, 32, 96>}, {pipeline_mode = #tpu.pipeline_mode<synchronous>, transform_indices = @transform_4, window_bounds = array<i64: 2, 1, 96>}, {pipeline_mode = #tpu.pipeline_mode<synchronous>, transform_indices = @transform_5, window_bounds = array<i64: 2, 32, 32>}, {pipeline_mode = #tpu.pipeline_mode<synchronous>, transform_indices = @transform_6, window_bounds = array<i64: 2, 1, 32>}, {pipeline_mode = #tpu.pipeline_mode<synchronous>, transform_indices = @transform_7, window_bounds = array<i64: 2, 1, 32>}, {pipeline_mode = #tpu.pipeline_mode<synchronous>, transform_indices = @transform_8, window_bounds = array<i64: 2, 1, 32>}, {pipeline_mode = #tpu.pipeline_mode<synchronous>, transform_indices = @transform_9, window_bounds = array<i64: 2, 32, 64>}, {pipeline_mode = #tpu.pipeline_mode<synchronous>, transform_indices = @transform_10, window_bounds = array<i64: 2, 1, 64>}, {pipeline_mode = #tpu.pipeline_mode<synchronous>, transform_indices = @transform_11, window_bounds = array<i64: 2, 64, 32>}, {pipeline_mode = #tpu.pipeline_mode<synchronous>, transform_indices = @transform_12, window_bounds = array<i64: 2, 1, 32>}, {pipeline_mode = #tpu.pipeline_mode<synchronous>, transform_indices = @transform_13, window_bounds = array<i64: 2, 1, 32>}, {pipeline_mode = #tpu.pipeline_mode<synchronous>, transform_indices = @transform_14, window_bounds = array<i64: 2, 1, 32>}, {pipeline_mode = #tpu.pipeline_mode<synchronous>, transform_indices = @transform_15, window_bounds = array<i64: 2, 32>}]} {
    %c0 = arith.constant 0 : index
    %c0_0 = arith.constant 0 : index
    %0 = vector.load %arg1[%c0, %c0_0] : memref<16x16xf32, #tpu.memory_space<vmem>>, vector<16x16xf32>
    %c0_1 = arith.constant 0 : index
    %c0_2 = arith.constant 0 : index
    %1 = vector.load %arg2[%c0_1, %c0_2] : memref<16x32xf32, #tpu.memory_space<vmem>>, vector<16x32xf32>
    %cst = arith.constant dense<0.000000e+00> : vector<16x32xf32>
    %2 = tpu.matmul %0, %1, %cst {dimension_numbers = #tpu.dot_dimension_numbers<[1], [0], [0], [1], [0, 0, 1, 1], [], []>} : vector<16x16xf32>, vector<16x32xf32>, vector<16x32xf32> -> vector<16x32xf32>
    %c0_3 = arith.constant 0 : index
    %c0_4 = arith.constant 0 : index
    %3 = vector.load %arg3[%c0_3, %c0_4] : memref<1x32xf32, #tpu.memory_space<vmem>>, vector<1x32xf32>
    %4 = vector.broadcast %3 : vector<1x32xf32> to vector<16x32xf32>
    %5 = arith.addf %2, %4 : vector<16x32xf32>
    %c0_5 = arith.constant 0 : index
    %c0_6 = arith.constant 0 : index
    %c0_7 = arith.constant 0 : index
    %6 = vector.load %arg4[%c0_5, %c0_6, %c0_7] : memref<2x32x96xf32, #tpu.memory_space<vmem>>, vector<1x32x96xf32>
    %7 = vector.shape_cast %6 : vector<1x32x96xf32> to vector<32x96xf32>
    %c0_8 = arith.constant 0 : index
    %c0_9 = arith.constant 0 : index
    %c0_10 = arith.constant 0 : index
    %8 = vector.load %arg5[%c0_8, %c0_9, %c0_10] : memref<2x1x96xf32, #tpu.memory_space<vmem>>, vector<1x1x96xf32>
    %9 = vector.shape_cast %8 : vector<1x1x96xf32> to vector<1x96xf32>
    %c0_11 = arith.constant 0 : index
    %c0_12 = arith.constant 0 : index
    %c0_13 = arith.constant 0 : index
    %10 = vector.load %arg6[%c0_11, %c0_12, %c0_13] : memref<2x32x32xf32, #tpu.memory_space<vmem>>, vector<1x32x32xf32>
    %11 = vector.shape_cast %10 : vector<1x32x32xf32> to vector<32x32xf32>
    %c0_14 = arith.constant 0 : index
    %c0_15 = arith.constant 0 : index
    %c0_16 = arith.constant 0 : index
    %12 = vector.load %arg7[%c0_14, %c0_15, %c0_16] : memref<2x1x32xf32, #tpu.memory_space<vmem>>, vector<1x1x32xf32>
    %13 = vector.shape_cast %12 : vector<1x1x32xf32> to vector<1x32xf32>
    %c0_17 = arith.constant 0 : index
    %c0_18 = arith.constant 0 : index
    %c0_19 = arith.constant 0 : index
    %14 = vector.load %arg8[%c0_17, %c0_18, %c0_19] : memref<2x1x32xf32, #tpu.memory_space<vmem>>, vector<1x1x32xf32>
    %15 = vector.shape_cast %14 : vector<1x1x32xf32> to vector<1x32xf32>
    %c0_20 = arith.constant 0 : index
    %c0_21 = arith.constant 0 : index
    %c0_22 = arith.constant 0 : index
    %16 = vector.load %arg9[%c0_20, %c0_21, %c0_22] : memref<2x1x32xf32, #tpu.memory_space<vmem>>, vector<1x1x32xf32>
    %17 = vector.shape_cast %16 : vector<1x1x32xf32> to vector<1x32xf32>
    %c0_23 = arith.constant 0 : index
    %c0_24 = arith.constant 0 : index
    %c0_25 = arith.constant 0 : index
    %18 = vector.load %arg10[%c0_23, %c0_24, %c0_25] : memref<2x32x64xf32, #tpu.memory_space<vmem>>, vector<1x32x64xf32>
    %19 = vector.shape_cast %18 : vector<1x32x64xf32> to vector<32x64xf32>
    %c0_26 = arith.constant 0 : index
    %c0_27 = arith.constant 0 : index
    %c0_28 = arith.constant 0 : index
    %20 = vector.load %arg11[%c0_26, %c0_27, %c0_28] : memref<2x1x64xf32, #tpu.memory_space<vmem>>, vector<1x1x64xf32>
    %21 = vector.shape_cast %20 : vector<1x1x64xf32> to vector<1x64xf32>
    %c0_29 = arith.constant 0 : index
    %c0_30 = arith.constant 0 : index
    %c0_31 = arith.constant 0 : index
    %22 = vector.load %arg12[%c0_29, %c0_30, %c0_31] : memref<2x64x32xf32, #tpu.memory_space<vmem>>, vector<1x64x32xf32>
    %23 = vector.shape_cast %22 : vector<1x64x32xf32> to vector<64x32xf32>
    %c0_32 = arith.constant 0 : index
    %c0_33 = arith.constant 0 : index
    %c0_34 = arith.constant 0 : index
    %24 = vector.load %arg13[%c0_32, %c0_33, %c0_34] : memref<2x1x32xf32, #tpu.memory_space<vmem>>, vector<1x1x32xf32>
    %25 = vector.shape_cast %24 : vector<1x1x32xf32> to vector<1x32xf32>
    %c0_35 = arith.constant 0 : index
    %c0_36 = arith.constant 0 : index
    %c0_37 = arith.constant 0 : index
    %26 = vector.load %arg14[%c0_35, %c0_36, %c0_37] : memref<2x1x32xf32, #tpu.memory_space<vmem>>, vector<1x1x32xf32>
    %27 = vector.shape_cast %26 : vector<1x1x32xf32> to vector<1x32xf32>
    %c0_38 = arith.constant 0 : index
    %c0_39 = arith.constant 0 : index
    %c0_40 = arith.constant 0 : index
    %28 = vector.load %arg15[%c0_38, %c0_39, %c0_40] : memref<2x1x32xf32, #tpu.memory_space<vmem>>, vector<1x1x32xf32>
    %29 = vector.shape_cast %28 : vector<1x1x32xf32> to vector<1x32xf32>
    %cst_41 = arith.constant dense<0.000000e+00> : vector<16x96xf32>
    %30 = tpu.matmul %5, %7, %cst_41 {dimension_numbers = #tpu.dot_dimension_numbers<[1], [0], [0], [1], [0, 0, 1, 1], [], []>} : vector<16x32xf32>, vector<32x96xf32>, vector<16x96xf32> -> vector<16x96xf32>
    %31 = vector.broadcast %9 : vector<1x96xf32> to vector<16x96xf32>
    %32 = arith.addf %30, %31 : vector<16x96xf32>
    %33 = vector.extract_strided_slice %32 {offsets = [0, 0], sizes = [16, 32], strides = [1, 1]} : vector<16x96xf32> to vector<16x32xf32>
    %34 = vector.extract_strided_slice %32 {offsets = [0, 32], sizes = [16, 32], strides = [1, 1]} : vector<16x96xf32> to vector<16x32xf32>
    %35 = vector.extract_strided_slice %32 {offsets = [0, 64], sizes = [16, 32], strides = [1, 1]} : vector<16x96xf32> to vector<16x32xf32>
    %36 = vector.extract_strided_slice %33 {offsets = [0, 0], sizes = [8, 8], strides = [1, 1]} : vector<16x32xf32> to vector<8x8xf32>
    %37 = vector.extract_strided_slice %34 {offsets = [0, 0], sizes = [8, 8], strides = [1, 1]} : vector<16x32xf32> to vector<8x8xf32>
    %38 = vector.extract_strided_slice %35 {offsets = [0, 0], sizes = [8, 8], strides = [1, 1]} : vector<16x32xf32> to vector<8x8xf32>
    %cst_42 = arith.constant dense<0.000000e+00> : vector<8x8xf32>
    %39 = tpu.matmul %36, %37, %cst_42 {dimension_numbers = #tpu.dot_dimension_numbers<[1], [1], [0], [0], [0, 0, 1, 0], [], []>} : vector<8x8xf32>, vector<8x8xf32>, vector<8x8xf32> -> vector<8x8xf32>
    %cst_43 = arith.constant 0.353553385 : f32
    %40 = vector.broadcast %cst_43 : f32 to vector<8x8xf32>
    %41 = arith.mulf %39, %40 : vector<8x8xf32>
    %cst_44 = arith.constant dense<0xFF800000> : vector<8xf32>
    %42 = vector.multi_reduction <maximumf>, %41, %cst_44 [1] : vector<8x8xf32> to vector<8xf32>
    %43 = vector.shape_cast %42 : vector<8xf32> to vector<8x1xf32>
    %44 = vector.broadcast %43 : vector<8x1xf32> to vector<8x8xf32>
    %45 = arith.subf %41, %44 : vector<8x8xf32>
    %46 = math.exp %45 : vector<8x8xf32>
    %cst_45 = arith.constant dense<0.000000e+00> : vector<8xf32>
    %47 = vector.multi_reduction <add>, %46, %cst_45 [1] : vector<8x8xf32> to vector<8xf32>
    %48 = vector.shape_cast %47 : vector<8xf32> to vector<8x1xf32>
    %49 = tpu.reciprocal %48 {approx = true} : vector<8x1xf32> -> vector<8x1xf32>
    %50 = vector.broadcast %49 : vector<8x1xf32> to vector<8x8xf32>
    %51 = arith.mulf %46, %50 : vector<8x8xf32>
    %cst_46 = arith.constant dense<0.000000e+00> : vector<8x8xf32>
    %52 = tpu.matmul %51, %38, %cst_46 {dimension_numbers = #tpu.dot_dimension_numbers<[1], [0], [0], [1], [0, 0, 1, 1], [], []>} : vector<8x8xf32>, vector<8x8xf32>, vector<8x8xf32> -> vector<8x8xf32>
    %53 = vector.extract_strided_slice %33 {offsets = [0, 8], sizes = [8, 8], strides = [1, 1]} : vector<16x32xf32> to vector<8x8xf32>
    %54 = vector.extract_strided_slice %34 {offsets = [0, 8], sizes = [8, 8], strides = [1, 1]} : vector<16x32xf32> to vector<8x8xf32>
    %55 = vector.extract_strided_slice %35 {offsets = [0, 8], sizes = [8, 8], strides = [1, 1]} : vector<16x32xf32> to vector<8x8xf32>
    %cst_47 = arith.constant dense<0.000000e+00> : vector<8x8xf32>
    %56 = tpu.matmul %53, %54, %cst_47 {dimension_numbers = #tpu.dot_dimension_numbers<[1], [1], [0], [0], [0, 0, 1, 0], [], []>} : vector<8x8xf32>, vector<8x8xf32>, vector<8x8xf32> -> vector<8x8xf32>
    %cst_48 = arith.constant 0.353553385 : f32
    %57 = vector.broadcast %cst_48 : f32 to vector<8x8xf32>
    %58 = arith.mulf %56, %57 : vector<8x8xf32>
    %cst_49 = arith.constant dense<0xFF800000> : vector<8xf32>
    %59 = vector.multi_reduction <maximumf>, %58, %cst_49 [1] : vector<8x8xf32> to vector<8xf32>
    %60 = vector.shape_cast %59 : vector<8xf32> to vector<8x1xf32>
    %61 = vector.broadcast %60 : vector<8x1xf32> to vector<8x8xf32>
    %62 = arith.subf %58, %61 : vector<8x8xf32>
    %63 = math.exp %62 : vector<8x8xf32>
    %cst_50 = arith.constant dense<0.000000e+00> : vector<8xf32>
    %64 = vector.multi_reduction <add>, %63, %cst_50 [1] : vector<8x8xf32> to vector<8xf32>
    %65 = vector.shape_cast %64 : vector<8xf32> to vector<8x1xf32>
    %66 = tpu.reciprocal %65 {approx = true} : vector<8x1xf32> -> vector<8x1xf32>
    %67 = vector.broadcast %66 : vector<8x1xf32> to vector<8x8xf32>
    %68 = arith.mulf %63, %67 : vector<8x8xf32>
    %cst_51 = arith.constant dense<0.000000e+00> : vector<8x8xf32>
    %69 = tpu.matmul %68, %55, %cst_51 {dimension_numbers = #tpu.dot_dimension_numbers<[1], [0], [0], [1], [0, 0, 1, 1], [], []>} : vector<8x8xf32>, vector<8x8xf32>, vector<8x8xf32> -> vector<8x8xf32>
    %70 = vector.extract_strided_slice %33 {offsets = [0, 16], sizes = [8, 8], strides = [1, 1]} : vector<16x32xf32> to vector<8x8xf32>
    %71 = vector.extract_strided_slice %34 {offsets = [0, 16], sizes = [8, 8], strides = [1, 1]} : vector<16x32xf32> to vector<8x8xf32>
    %72 = vector.extract_strided_slice %35 {offsets = [0, 16], sizes = [8, 8], strides = [1, 1]} : vector<16x32xf32> to vector<8x8xf32>
    %cst_52 = arith.constant dense<0.000000e+00> : vector<8x8xf32>
    %73 = tpu.matmul %70, %71, %cst_52 {dimension_numbers = #tpu.dot_dimension_numbers<[1], [1], [0], [0], [0, 0, 1, 0], [], []>} : vector<8x8xf32>, vector<8x8xf32>, vector<8x8xf32> -> vector<8x8xf32>
    %cst_53 = arith.constant 0.353553385 : f32
    %74 = vector.broadcast %cst_53 : f32 to vector<8x8xf32>
    %75 = arith.mulf %73, %74 : vector<8x8xf32>
    %cst_54 = arith.constant dense<0xFF800000> : vector<8xf32>
    %76 = vector.multi_reduction <maximumf>, %75, %cst_54 [1] : vector<8x8xf32> to vector<8xf32>
    %77 = vector.shape_cast %76 : vector<8xf32> to vector<8x1xf32>
    %78 = vector.broadcast %77 : vector<8x1xf32> to vector<8x8xf32>
    %79 = arith.subf %75, %78 : vector<8x8xf32>
    %80 = math.exp %79 : vector<8x8xf32>
    %cst_55 = arith.constant dense<0.000000e+00> : vector<8xf32>
    %81 = vector.multi_reduction <add>, %80, %cst_55 [1] : vector<8x8xf32> to vector<8xf32>
    %82 = vector.shape_cast %81 : vector<8xf32> to vector<8x1xf32>
    %83 = tpu.reciprocal %82 {approx = true} : vector<8x1xf32> -> vector<8x1xf32>
    %84 = vector.broadcast %83 : vector<8x1xf32> to vector<8x8xf32>
    %85 = arith.mulf %80, %84 : vector<8x8xf32>
    %cst_56 = arith.constant dense<0.000000e+00> : vector<8x8xf32>
    %86 = tpu.matmul %85, %72, %cst_56 {dimension_numbers = #tpu.dot_dimension_numbers<[1], [0], [0], [1], [0, 0, 1, 1], [], []>} : vector<8x8xf32>, vector<8x8xf32>, vector<8x8xf32> -> vector<8x8xf32>
    %87 = vector.extract_strided_slice %33 {offsets = [0, 24], sizes = [8, 8], strides = [1, 1]} : vector<16x32xf32> to vector<8x8xf32>
    %88 = vector.extract_strided_slice %34 {offsets = [0, 24], sizes = [8, 8], strides = [1, 1]} : vector<16x32xf32> to vector<8x8xf32>
    %89 = vector.extract_strided_slice %35 {offsets = [0, 24], sizes = [8, 8], strides = [1, 1]} : vector<16x32xf32> to vector<8x8xf32>
    %cst_57 = arith.constant dense<0.000000e+00> : vector<8x8xf32>
    %90 = tpu.matmul %87, %88, %cst_57 {dimension_numbers = #tpu.dot_dimension_numbers<[1], [1], [0], [0], [0, 0, 1, 0], [], []>} : vector<8x8xf32>, vector<8x8xf32>, vector<8x8xf32> -> vector<8x8xf32>
    %cst_58 = arith.constant 0.353553385 : f32
    %91 = vector.broadcast %cst_58 : f32 to vector<8x8xf32>
    %92 = arith.mulf %90, %91 : vector<8x8xf32>
    %cst_59 = arith.constant dense<0xFF800000> : vector<8xf32>
    %93 = vector.multi_reduction <maximumf>, %92, %cst_59 [1] : vector<8x8xf32> to vector<8xf32>
    %94 = vector.shape_cast %93 : vector<8xf32> to vector<8x1xf32>
    %95 = vector.broadcast %94 : vector<8x1xf32> to vector<8x8xf32>
    %96 = arith.subf %92, %95 : vector<8x8xf32>
    %97 = math.exp %96 : vector<8x8xf32>
    %cst_60 = arith.constant dense<0.000000e+00> : vector<8xf32>
    %98 = vector.multi_reduction <add>, %97, %cst_60 [1] : vector<8x8xf32> to vector<8xf32>
    %99 = vector.shape_cast %98 : vector<8xf32> to vector<8x1xf32>
    %100 = tpu.reciprocal %99 {approx = true} : vector<8x1xf32> -> vector<8x1xf32>
    %101 = vector.broadcast %100 : vector<8x1xf32> to vector<8x8xf32>
    %102 = arith.mulf %97, %101 : vector<8x8xf32>
    %cst_61 = arith.constant dense<0.000000e+00> : vector<8x8xf32>
    %103 = tpu.matmul %102, %89, %cst_61 {dimension_numbers = #tpu.dot_dimension_numbers<[1], [0], [0], [1], [0, 0, 1, 1], [], []>} : vector<8x8xf32>, vector<8x8xf32>, vector<8x8xf32> -> vector<8x8xf32>
    %104 = tpu.concatenate %52, %69, %86, %103 in 1 : vector<8x8xf32>, vector<8x8xf32>, vector<8x8xf32>, vector<8x8xf32> -> vector<8x32xf32>
    %105 = vector.extract_strided_slice %33 {offsets = [8, 0], sizes = [8, 8], strides = [1, 1]} : vector<16x32xf32> to vector<8x8xf32>
    %106 = vector.extract_strided_slice %34 {offsets = [8, 0], sizes = [8, 8], strides = [1, 1]} : vector<16x32xf32> to vector<8x8xf32>
    %107 = vector.extract_strided_slice %35 {offsets = [8, 0], sizes = [8, 8], strides = [1, 1]} : vector<16x32xf32> to vector<8x8xf32>
    %cst_62 = arith.constant dense<0.000000e+00> : vector<8x8xf32>
    %108 = tpu.matmul %105, %106, %cst_62 {dimension_numbers = #tpu.dot_dimension_numbers<[1], [1], [0], [0], [0, 0, 1, 0], [], []>} : vector<8x8xf32>, vector<8x8xf32>, vector<8x8xf32> -> vector<8x8xf32>
    %cst_63 = arith.constant 0.353553385 : f32
    %109 = vector.broadcast %cst_63 : f32 to vector<8x8xf32>
    %110 = arith.mulf %108, %109 : vector<8x8xf32>
    %cst_64 = arith.constant dense<0xFF800000> : vector<8xf32>
    %111 = vector.multi_reduction <maximumf>, %110, %cst_64 [1] : vector<8x8xf32> to vector<8xf32>
    %112 = vector.shape_cast %111 : vector<8xf32> to vector<8x1xf32>
    %113 = vector.broadcast %112 : vector<8x1xf32> to vector<8x8xf32>
    %114 = arith.subf %110, %113 : vector<8x8xf32>
    %115 = math.exp %114 : vector<8x8xf32>
    %cst_65 = arith.constant dense<0.000000e+00> : vector<8xf32>
    %116 = vector.multi_reduction <add>, %115, %cst_65 [1] : vector<8x8xf32> to vector<8xf32>
    %117 = vector.shape_cast %116 : vector<8xf32> to vector<8x1xf32>
    %118 = tpu.reciprocal %117 {approx = true} : vector<8x1xf32> -> vector<8x1xf32>
    %119 = vector.broadcast %118 : vector<8x1xf32> to vector<8x8xf32>
    %120 = arith.mulf %115, %119 : vector<8x8xf32>
    %cst_66 = arith.constant dense<0.000000e+00> : vector<8x8xf32>
    %121 = tpu.matmul %120, %107, %cst_66 {dimension_numbers = #tpu.dot_dimension_numbers<[1], [0], [0], [1], [0, 0, 1, 1], [], []>} : vector<8x8xf32>, vector<8x8xf32>, vector<8x8xf32> -> vector<8x8xf32>
    %122 = vector.extract_strided_slice %33 {offsets = [8, 8], sizes = [8, 8], strides = [1, 1]} : vector<16x32xf32> to vector<8x8xf32>
    %123 = vector.extract_strided_slice %34 {offsets = [8, 8], sizes = [8, 8], strides = [1, 1]} : vector<16x32xf32> to vector<8x8xf32>
    %124 = vector.extract_strided_slice %35 {offsets = [8, 8], sizes = [8, 8], strides = [1, 1]} : vector<16x32xf32> to vector<8x8xf32>
    %cst_67 = arith.constant dense<0.000000e+00> : vector<8x8xf32>
    %125 = tpu.matmul %122, %123, %cst_67 {dimension_numbers = #tpu.dot_dimension_numbers<[1], [1], [0], [0], [0, 0, 1, 0], [], []>} : vector<8x8xf32>, vector<8x8xf32>, vector<8x8xf32> -> vector<8x8xf32>
    %cst_68 = arith.constant 0.353553385 : f32
    %126 = vector.broadcast %cst_68 : f32 to vector<8x8xf32>
    %127 = arith.mulf %125, %126 : vector<8x8xf32>
    %cst_69 = arith.constant dense<0xFF800000> : vector<8xf32>
    %128 = vector.multi_reduction <maximumf>, %127, %cst_69 [1] : vector<8x8xf32> to vector<8xf32>
    %129 = vector.shape_cast %128 : vector<8xf32> to vector<8x1xf32>
    %130 = vector.broadcast %129 : vector<8x1xf32> to vector<8x8xf32>
    %131 = arith.subf %127, %130 : vector<8x8xf32>
    %132 = math.exp %131 : vector<8x8xf32>
    %cst_70 = arith.constant dense<0.000000e+00> : vector<8xf32>
    %133 = vector.multi_reduction <add>, %132, %cst_70 [1] : vector<8x8xf32> to vector<8xf32>
    %134 = vector.shape_cast %133 : vector<8xf32> to vector<8x1xf32>
    %135 = tpu.reciprocal %134 {approx = true} : vector<8x1xf32> -> vector<8x1xf32>
    %136 = vector.broadcast %135 : vector<8x1xf32> to vector<8x8xf32>
    %137 = arith.mulf %132, %136 : vector<8x8xf32>
    %cst_71 = arith.constant dense<0.000000e+00> : vector<8x8xf32>
    %138 = tpu.matmul %137, %124, %cst_71 {dimension_numbers = #tpu.dot_dimension_numbers<[1], [0], [0], [1], [0, 0, 1, 1], [], []>} : vector<8x8xf32>, vector<8x8xf32>, vector<8x8xf32> -> vector<8x8xf32>
    %139 = vector.extract_strided_slice %33 {offsets = [8, 16], sizes = [8, 8], strides = [1, 1]} : vector<16x32xf32> to vector<8x8xf32>
    %140 = vector.extract_strided_slice %34 {offsets = [8, 16], sizes = [8, 8], strides = [1, 1]} : vector<16x32xf32> to vector<8x8xf32>
    %141 = vector.extract_strided_slice %35 {offsets = [8, 16], sizes = [8, 8], strides = [1, 1]} : vector<16x32xf32> to vector<8x8xf32>
    %cst_72 = arith.constant dense<0.000000e+00> : vector<8x8xf32>
    %142 = tpu.matmul %139, %140, %cst_72 {dimension_numbers = #tpu.dot_dimension_numbers<[1], [1], [0], [0], [0, 0, 1, 0], [], []>} : vector<8x8xf32>, vector<8x8xf32>, vector<8x8xf32> -> vector<8x8xf32>
    %cst_73 = arith.constant 0.353553385 : f32
    %143 = vector.broadcast %cst_73 : f32 to vector<8x8xf32>
    %144 = arith.mulf %142, %143 : vector<8x8xf32>
    %cst_74 = arith.constant dense<0xFF800000> : vector<8xf32>
    %145 = vector.multi_reduction <maximumf>, %144, %cst_74 [1] : vector<8x8xf32> to vector<8xf32>
    %146 = vector.shape_cast %145 : vector<8xf32> to vector<8x1xf32>
    %147 = vector.broadcast %146 : vector<8x1xf32> to vector<8x8xf32>
    %148 = arith.subf %144, %147 : vector<8x8xf32>
    %149 = math.exp %148 : vector<8x8xf32>
    %cst_75 = arith.constant dense<0.000000e+00> : vector<8xf32>
    %150 = vector.multi_reduction <add>, %149, %cst_75 [1] : vector<8x8xf32> to vector<8xf32>
    %151 = vector.shape_cast %150 : vector<8xf32> to vector<8x1xf32>
    %152 = tpu.reciprocal %151 {approx = true} : vector<8x1xf32> -> vector<8x1xf32>
    %153 = vector.broadcast %152 : vector<8x1xf32> to vector<8x8xf32>
    %154 = arith.mulf %149, %153 : vector<8x8xf32>
    %cst_76 = arith.constant dense<0.000000e+00> : vector<8x8xf32>
    %155 = tpu.matmul %154, %141, %cst_76 {dimension_numbers = #tpu.dot_dimension_numbers<[1], [0], [0], [1], [0, 0, 1, 1], [], []>} : vector<8x8xf32>, vector<8x8xf32>, vector<8x8xf32> -> vector<8x8xf32>
    %156 = vector.extract_strided_slice %33 {offsets = [8, 24], sizes = [8, 8], strides = [1, 1]} : vector<16x32xf32> to vector<8x8xf32>
    %157 = vector.extract_strided_slice %34 {offsets = [8, 24], sizes = [8, 8], strides = [1, 1]} : vector<16x32xf32> to vector<8x8xf32>
    %158 = vector.extract_strided_slice %35 {offsets = [8, 24], sizes = [8, 8], strides = [1, 1]} : vector<16x32xf32> to vector<8x8xf32>
    %cst_77 = arith.constant dense<0.000000e+00> : vector<8x8xf32>
    %159 = tpu.matmul %156, %157, %cst_77 {dimension_numbers = #tpu.dot_dimension_numbers<[1], [1], [0], [0], [0, 0, 1, 0], [], []>} : vector<8x8xf32>, vector<8x8xf32>, vector<8x8xf32> -> vector<8x8xf32>
    %cst_78 = arith.constant 0.353553385 : f32
    %160 = vector.broadcast %cst_78 : f32 to vector<8x8xf32>
    %161 = arith.mulf %159, %160 : vector<8x8xf32>
    %cst_79 = arith.constant dense<0xFF800000> : vector<8xf32>
    %162 = vector.multi_reduction <maximumf>, %161, %cst_79 [1] : vector<8x8xf32> to vector<8xf32>
    %163 = vector.shape_cast %162 : vector<8xf32> to vector<8x1xf32>
    %164 = vector.broadcast %163 : vector<8x1xf32> to vector<8x8xf32>
    %165 = arith.subf %161, %164 : vector<8x8xf32>
    %166 = math.exp %165 : vector<8x8xf32>
    %cst_80 = arith.constant dense<0.000000e+00> : vector<8xf32>
    %167 = vector.multi_reduction <add>, %166, %cst_80 [1] : vector<8x8xf32> to vector<8xf32>
    %168 = vector.shape_cast %167 : vector<8xf32> to vector<8x1xf32>
    %169 = tpu.reciprocal %168 {approx = true} : vector<8x1xf32> -> vector<8x1xf32>
    %170 = vector.broadcast %169 : vector<8x1xf32> to vector<8x8xf32>
    %171 = arith.mulf %166, %170 : vector<8x8xf32>
    %cst_81 = arith.constant dense<0.000000e+00> : vector<8x8xf32>
    %172 = tpu.matmul %171, %158, %cst_81 {dimension_numbers = #tpu.dot_dimension_numbers<[1], [0], [0], [1], [0, 0, 1, 1], [], []>} : vector<8x8xf32>, vector<8x8xf32>, vector<8x8xf32> -> vector<8x8xf32>
    %173 = tpu.concatenate %121, %138, %155, %172 in 1 : vector<8x8xf32>, vector<8x8xf32>, vector<8x8xf32>, vector<8x8xf32> -> vector<8x32xf32>
    %174 = tpu.concatenate %104, %173 in 0 : vector<8x32xf32>, vector<8x32xf32> -> vector<16x32xf32>
    %cst_82 = arith.constant dense<0.000000e+00> : vector<16x32xf32>
    %175 = tpu.matmul %174, %11, %cst_82 {dimension_numbers = #tpu.dot_dimension_numbers<[1], [0], [0], [1], [0, 0, 1, 1], [], []>} : vector<16x32xf32>, vector<32x32xf32>, vector<16x32xf32> -> vector<16x32xf32>
    %176 = vector.broadcast %13 : vector<1x32xf32> to vector<16x32xf32>
    %177 = arith.addf %175, %176 : vector<16x32xf32>
    %178 = arith.addf %5, %177 : vector<16x32xf32>
    %cst_83 = arith.constant dense<0.000000e+00> : vector<16xf32>
    %179 = vector.multi_reduction <add>, %178, %cst_83 [1] : vector<16x32xf32> to vector<16xf32>
    %180 = vector.shape_cast %179 : vector<16xf32> to vector<16x1xf32>
    %cst_84 = arith.constant 3.200000e+01 : f32
    %181 = vector.broadcast %cst_84 : f32 to vector<16x1xf32>
    %182 = arith.divf %180, %181 : vector<16x1xf32>
    %183 = vector.broadcast %182 : vector<16x1xf32> to vector<16x32xf32>
    %184 = arith.subf %178, %183 : vector<16x32xf32>
    %185 = arith.mulf %184, %184 : vector<16x32xf32>
    %cst_85 = arith.constant dense<0.000000e+00> : vector<16xf32>
    %186 = vector.multi_reduction <add>, %185, %cst_85 [1] : vector<16x32xf32> to vector<16xf32>
    %187 = vector.shape_cast %186 : vector<16xf32> to vector<16x1xf32>
    %cst_86 = arith.constant 3.200000e+01 : f32
    %188 = vector.broadcast %cst_86 : f32 to vector<16x1xf32>
    %189 = arith.divf %187, %188 : vector<16x1xf32>
    %190 = vector.broadcast %182 : vector<16x1xf32> to vector<16x32xf32>
    %191 = arith.subf %178, %190 : vector<16x32xf32>
    %cst_87 = arith.constant 9.99999974E-6 : f32
    %192 = vector.broadcast %cst_87 : f32 to vector<16x1xf32>
    %193 = arith.addf %189, %192 : vector<16x1xf32>
    %194 = math.rsqrt %193 : vector<16x1xf32>
    %195 = vector.broadcast %194 : vector<16x1xf32> to vector<16x32xf32>
    %196 = arith.mulf %191, %195 : vector<16x32xf32>
    %197 = vector.broadcast %15 : vector<1x32xf32> to vector<16x32xf32>
    %198 = arith.mulf %196, %197 : vector<16x32xf32>
    %199 = vector.broadcast %17 : vector<1x32xf32> to vector<16x32xf32>
    %200 = arith.addf %198, %199 : vector<16x32xf32>
    %cst_88 = arith.constant dense<0.000000e+00> : vector<16x64xf32>
    %201 = tpu.matmul %200, %19, %cst_88 {dimension_numbers = #tpu.dot_dimension_numbers<[1], [0], [0], [1], [0, 0, 1, 1], [], []>} : vector<16x32xf32>, vector<32x64xf32>, vector<16x64xf32> -> vector<16x64xf32>
    %202 = vector.broadcast %21 : vector<1x64xf32> to vector<16x64xf32>
    %203 = arith.addf %201, %202 : vector<16x64xf32>
    %cst_89 = arith.constant 0.000000e+00 : f32
    %204 = vector.broadcast %cst_89 : f32 to vector<16x64xf32>
    %205 = arith.maximumf %203, %204 : vector<16x64xf32>
    %cst_90 = arith.constant dense<0.000000e+00> : vector<16x32xf32>
    %206 = tpu.matmul %205, %23, %cst_90 {dimension_numbers = #tpu.dot_dimension_numbers<[1], [0], [0], [1], [0, 0, 1, 1], [], []>} : vector<16x64xf32>, vector<64x32xf32>, vector<16x32xf32> -> vector<16x32xf32>
    %207 = vector.broadcast %25 : vector<1x32xf32> to vector<16x32xf32>
    %208 = arith.addf %206, %207 : vector<16x32xf32>
    %209 = arith.addf %200, %208 : vector<16x32xf32>
    %cst_91 = arith.constant dense<0.000000e+00> : vector<16xf32>
    %210 = vector.multi_reduction <add>, %209, %cst_91 [1] : vector<16x32xf32> to vector<16xf32>
    %211 = vector.shape_cast %210 : vector<16xf32> to vector<16x1xf32>
    %cst_92 = arith.constant 3.200000e+01 : f32
    %212 = vector.broadcast %cst_92 : f32 to vector<16x1xf32>
    %213 = arith.divf %211, %212 : vector<16x1xf32>
    %214 = vector.broadcast %213 : vector<16x1xf32> to vector<16x32xf32>
    %215 = arith.subf %209, %214 : vector<16x32xf32>
    %216 = arith.mulf %215, %215 : vector<16x32xf32>
    %cst_93 = arith.constant dense<0.000000e+00> : vector<16xf32>
    %217 = vector.multi_reduction <add>, %216, %cst_93 [1] : vector<16x32xf32> to vector<16xf32>
    %218 = vector.shape_cast %217 : vector<16xf32> to vector<16x1xf32>
    %cst_94 = arith.constant 3.200000e+01 : f32
    %219 = vector.broadcast %cst_94 : f32 to vector<16x1xf32>
    %220 = arith.divf %218, %219 : vector<16x1xf32>
    %221 = vector.broadcast %213 : vector<16x1xf32> to vector<16x32xf32>
    %222 = arith.subf %209, %221 : vector<16x32xf32>
    %cst_95 = arith.constant 9.99999974E-6 : f32
    %223 = vector.broadcast %cst_95 : f32 to vector<16x1xf32>
    %224 = arith.addf %220, %223 : vector<16x1xf32>
    %225 = math.rsqrt %224 : vector<16x1xf32>
    %226 = vector.broadcast %225 : vector<16x1xf32> to vector<16x32xf32>
    %227 = arith.mulf %222, %226 : vector<16x32xf32>
    %228 = vector.broadcast %27 : vector<1x32xf32> to vector<16x32xf32>
    %229 = arith.mulf %227, %228 : vector<16x32xf32>
    %230 = vector.broadcast %29 : vector<1x32xf32> to vector<16x32xf32>
    %231 = arith.addf %229, %230 : vector<16x32xf32>
    %c1 = arith.constant 1 : index
    %c0_96 = arith.constant 0 : index
    %c0_97 = arith.constant 0 : index
    %232 = vector.load %arg4[%c1, %c0_96, %c0_97] : memref<2x32x96xf32, #tpu.memory_space<vmem>>, vector<1x32x96xf32>
    %233 = vector.shape_cast %232 : vector<1x32x96xf32> to vector<32x96xf32>
    %c1_98 = arith.constant 1 : index
    %c0_99 = arith.constant 0 : index
    %c0_100 = arith.constant 0 : index
    %234 = vector.load %arg5[%c1_98, %c0_99, %c0_100] : memref<2x1x96xf32, #tpu.memory_space<vmem>>, vector<1x1x96xf32>
    %235 = vector.shape_cast %234 : vector<1x1x96xf32> to vector<1x96xf32>
    %c1_101 = arith.constant 1 : index
    %c0_102 = arith.constant 0 : index
    %c0_103 = arith.constant 0 : index
    %236 = vector.load %arg6[%c1_101, %c0_102, %c0_103] : memref<2x32x32xf32, #tpu.memory_space<vmem>>, vector<1x32x32xf32>
    %237 = vector.shape_cast %236 : vector<1x32x32xf32> to vector<32x32xf32>
    %c1_104 = arith.constant 1 : index
    %c0_105 = arith.constant 0 : index
    %c0_106 = arith.constant 0 : index
    %238 = vector.load %arg7[%c1_104, %c0_105, %c0_106] : memref<2x1x32xf32, #tpu.memory_space<vmem>>, vector<1x1x32xf32>
    %239 = vector.shape_cast %238 : vector<1x1x32xf32> to vector<1x32xf32>
    %c1_107 = arith.constant 1 : index
    %c0_108 = arith.constant 0 : index
    %c0_109 = arith.constant 0 : index
    %240 = vector.load %arg8[%c1_107, %c0_108, %c0_109] : memref<2x1x32xf32, #tpu.memory_space<vmem>>, vector<1x1x32xf32>
    %241 = vector.shape_cast %240 : vector<1x1x32xf32> to vector<1x32xf32>
    %c1_110 = arith.constant 1 : index
    %c0_111 = arith.constant 0 : index
    %c0_112 = arith.constant 0 : index
    %242 = vector.load %arg9[%c1_110, %c0_111, %c0_112] : memref<2x1x32xf32, #tpu.memory_space<vmem>>, vector<1x1x32xf32>
    %243 = vector.shape_cast %242 : vector<1x1x32xf32> to vector<1x32xf32>
    %c1_113 = arith.constant 1 : index
    %c0_114 = arith.constant 0 : index
    %c0_115 = arith.constant 0 : index
    %244 = vector.load %arg10[%c1_113, %c0_114, %c0_115] : memref<2x32x64xf32, #tpu.memory_space<vmem>>, vector<1x32x64xf32>
    %245 = vector.shape_cast %244 : vector<1x32x64xf32> to vector<32x64xf32>
    %c1_116 = arith.constant 1 : index
    %c0_117 = arith.constant 0 : index
    %c0_118 = arith.constant 0 : index
    %246 = vector.load %arg11[%c1_116, %c0_117, %c0_118] : memref<2x1x64xf32, #tpu.memory_space<vmem>>, vector<1x1x64xf32>
    %247 = vector.shape_cast %246 : vector<1x1x64xf32> to vector<1x64xf32>
    %c1_119 = arith.constant 1 : index
    %c0_120 = arith.constant 0 : index
    %c0_121 = arith.constant 0 : index
    %248 = vector.load %arg12[%c1_119, %c0_120, %c0_121] : memref<2x64x32xf32, #tpu.memory_space<vmem>>, vector<1x64x32xf32>
    %249 = vector.shape_cast %248 : vector<1x64x32xf32> to vector<64x32xf32>
    %c1_122 = arith.constant 1 : index
    %c0_123 = arith.constant 0 : index
    %c0_124 = arith.constant 0 : index
    %250 = vector.load %arg13[%c1_122, %c0_123, %c0_124] : memref<2x1x32xf32, #tpu.memory_space<vmem>>, vector<1x1x32xf32>
    %251 = vector.shape_cast %250 : vector<1x1x32xf32> to vector<1x32xf32>
    %c1_125 = arith.constant 1 : index
    %c0_126 = arith.constant 0 : index
    %c0_127 = arith.constant 0 : index
    %252 = vector.load %arg14[%c1_125, %c0_126, %c0_127] : memref<2x1x32xf32, #tpu.memory_space<vmem>>, vector<1x1x32xf32>
    %253 = vector.shape_cast %252 : vector<1x1x32xf32> to vector<1x32xf32>
    %c1_128 = arith.constant 1 : index
    %c0_129 = arith.constant 0 : index
    %c0_130 = arith.constant 0 : index
    %254 = vector.load %arg15[%c1_128, %c0_129, %c0_130] : memref<2x1x32xf32, #tpu.memory_space<vmem>>, vector<1x1x32xf32>
    %255 = vector.shape_cast %254 : vector<1x1x32xf32> to vector<1x32xf32>
    %cst_131 = arith.constant dense<0.000000e+00> : vector<16x96xf32>
    %256 = tpu.matmul %231, %233, %cst_131 {dimension_numbers = #tpu.dot_dimension_numbers<[1], [0], [0], [1], [0, 0, 1, 1], [], []>} : vector<16x32xf32>, vector<32x96xf32>, vector<16x96xf32> -> vector<16x96xf32>
    %257 = vector.broadcast %235 : vector<1x96xf32> to vector<16x96xf32>
    %258 = arith.addf %256, %257 : vector<16x96xf32>
    %259 = vector.extract_strided_slice %258 {offsets = [0, 0], sizes = [16, 32], strides = [1, 1]} : vector<16x96xf32> to vector<16x32xf32>
    %260 = vector.extract_strided_slice %258 {offsets = [0, 32], sizes = [16, 32], strides = [1, 1]} : vector<16x96xf32> to vector<16x32xf32>
    %261 = vector.extract_strided_slice %258 {offsets = [0, 64], sizes = [16, 32], strides = [1, 1]} : vector<16x96xf32> to vector<16x32xf32>
    %262 = vector.extract_strided_slice %259 {offsets = [0, 0], sizes = [8, 8], strides = [1, 1]} : vector<16x32xf32> to vector<8x8xf32>
    %263 = vector.extract_strided_slice %260 {offsets = [0, 0], sizes = [8, 8], strides = [1, 1]} : vector<16x32xf32> to vector<8x8xf32>
    %264 = vector.extract_strided_slice %261 {offsets = [0, 0], sizes = [8, 8], strides = [1, 1]} : vector<16x32xf32> to vector<8x8xf32>
    %cst_132 = arith.constant dense<0.000000e+00> : vector<8x8xf32>
    %265 = tpu.matmul %262, %263, %cst_132 {dimension_numbers = #tpu.dot_dimension_numbers<[1], [1], [0], [0], [0, 0, 1, 0], [], []>} : vector<8x8xf32>, vector<8x8xf32>, vector<8x8xf32> -> vector<8x8xf32>
    %cst_133 = arith.constant 0.353553385 : f32
    %266 = vector.broadcast %cst_133 : f32 to vector<8x8xf32>
    %267 = arith.mulf %265, %266 : vector<8x8xf32>
    %cst_134 = arith.constant dense<0xFF800000> : vector<8xf32>
    %268 = vector.multi_reduction <maximumf>, %267, %cst_134 [1] : vector<8x8xf32> to vector<8xf32>
    %269 = vector.shape_cast %268 : vector<8xf32> to vector<8x1xf32>
    %270 = vector.broadcast %269 : vector<8x1xf32> to vector<8x8xf32>
    %271 = arith.subf %267, %270 : vector<8x8xf32>
    %272 = math.exp %271 : vector<8x8xf32>
    %cst_135 = arith.constant dense<0.000000e+00> : vector<8xf32>
    %273 = vector.multi_reduction <add>, %272, %cst_135 [1] : vector<8x8xf32> to vector<8xf32>
    %274 = vector.shape_cast %273 : vector<8xf32> to vector<8x1xf32>
    %275 = tpu.reciprocal %274 {approx = true} : vector<8x1xf32> -> vector<8x1xf32>
    %276 = vector.broadcast %275 : vector<8x1xf32> to vector<8x8xf32>
    %277 = arith.mulf %272, %276 : vector<8x8xf32>
    %cst_136 = arith.constant dense<0.000000e+00> : vector<8x8xf32>
    %278 = tpu.matmul %277, %264, %cst_136 {dimension_numbers = #tpu.dot_dimension_numbers<[1], [0], [0], [1], [0, 0, 1, 1], [], []>} : vector<8x8xf32>, vector<8x8xf32>, vector<8x8xf32> -> vector<8x8xf32>
    %279 = vector.extract_strided_slice %259 {offsets = [0, 8], sizes = [8, 8], strides = [1, 1]} : vector<16x32xf32> to vector<8x8xf32>
    %280 = vector.extract_strided_slice %260 {offsets = [0, 8], sizes = [8, 8], strides = [1, 1]} : vector<16x32xf32> to vector<8x8xf32>
    %281 = vector.extract_strided_slice %261 {offsets = [0, 8], sizes = [8, 8], strides = [1, 1]} : vector<16x32xf32> to vector<8x8xf32>
    %cst_137 = arith.constant dense<0.000000e+00> : vector<8x8xf32>
    %282 = tpu.matmul %279, %280, %cst_137 {dimension_numbers = #tpu.dot_dimension_numbers<[1], [1], [0], [0], [0, 0, 1, 0], [], []>} : vector<8x8xf32>, vector<8x8xf32>, vector<8x8xf32> -> vector<8x8xf32>
    %cst_138 = arith.constant 0.353553385 : f32
    %283 = vector.broadcast %cst_138 : f32 to vector<8x8xf32>
    %284 = arith.mulf %282, %283 : vector<8x8xf32>
    %cst_139 = arith.constant dense<0xFF800000> : vector<8xf32>
    %285 = vector.multi_reduction <maximumf>, %284, %cst_139 [1] : vector<8x8xf32> to vector<8xf32>
    %286 = vector.shape_cast %285 : vector<8xf32> to vector<8x1xf32>
    %287 = vector.broadcast %286 : vector<8x1xf32> to vector<8x8xf32>
    %288 = arith.subf %284, %287 : vector<8x8xf32>
    %289 = math.exp %288 : vector<8x8xf32>
    %cst_140 = arith.constant dense<0.000000e+00> : vector<8xf32>
    %290 = vector.multi_reduction <add>, %289, %cst_140 [1] : vector<8x8xf32> to vector<8xf32>
    %291 = vector.shape_cast %290 : vector<8xf32> to vector<8x1xf32>
    %292 = tpu.reciprocal %291 {approx = true} : vector<8x1xf32> -> vector<8x1xf32>
    %293 = vector.broadcast %292 : vector<8x1xf32> to vector<8x8xf32>
    %294 = arith.mulf %289, %293 : vector<8x8xf32>
    %cst_141 = arith.constant dense<0.000000e+00> : vector<8x8xf32>
    %295 = tpu.matmul %294, %281, %cst_141 {dimension_numbers = #tpu.dot_dimension_numbers<[1], [0], [0], [1], [0, 0, 1, 1], [], []>} : vector<8x8xf32>, vector<8x8xf32>, vector<8x8xf32> -> vector<8x8xf32>
    %296 = vector.extract_strided_slice %259 {offsets = [0, 16], sizes = [8, 8], strides = [1, 1]} : vector<16x32xf32> to vector<8x8xf32>
    %297 = vector.extract_strided_slice %260 {offsets = [0, 16], sizes = [8, 8], strides = [1, 1]} : vector<16x32xf32> to vector<8x8xf32>
    %298 = vector.extract_strided_slice %261 {offsets = [0, 16], sizes = [8, 8], strides = [1, 1]} : vector<16x32xf32> to vector<8x8xf32>
    %cst_142 = arith.constant dense<0.000000e+00> : vector<8x8xf32>
    %299 = tpu.matmul %296, %297, %cst_142 {dimension_numbers = #tpu.dot_dimension_numbers<[1], [1], [0], [0], [0, 0, 1, 0], [], []>} : vector<8x8xf32>, vector<8x8xf32>, vector<8x8xf32> -> vector<8x8xf32>
    %cst_143 = arith.constant 0.353553385 : f32
    %300 = vector.broadcast %cst_143 : f32 to vector<8x8xf32>
    %301 = arith.mulf %299, %300 : vector<8x8xf32>
    %cst_144 = arith.constant dense<0xFF800000> : vector<8xf32>
    %302 = vector.multi_reduction <maximumf>, %301, %cst_144 [1] : vector<8x8xf32> to vector<8xf32>
    %303 = vector.shape_cast %302 : vector<8xf32> to vector<8x1xf32>
    %304 = vector.broadcast %303 : vector<8x1xf32> to vector<8x8xf32>
    %305 = arith.subf %301, %304 : vector<8x8xf32>
    %306 = math.exp %305 : vector<8x8xf32>
    %cst_145 = arith.constant dense<0.000000e+00> : vector<8xf32>
    %307 = vector.multi_reduction <add>, %306, %cst_145 [1] : vector<8x8xf32> to vector<8xf32>
    %308 = vector.shape_cast %307 : vector<8xf32> to vector<8x1xf32>
    %309 = tpu.reciprocal %308 {approx = true} : vector<8x1xf32> -> vector<8x1xf32>
    %310 = vector.broadcast %309 : vector<8x1xf32> to vector<8x8xf32>
    %311 = arith.mulf %306, %310 : vector<8x8xf32>
    %cst_146 = arith.constant dense<0.000000e+00> : vector<8x8xf32>
    %312 = tpu.matmul %311, %298, %cst_146 {dimension_numbers = #tpu.dot_dimension_numbers<[1], [0], [0], [1], [0, 0, 1, 1], [], []>} : vector<8x8xf32>, vector<8x8xf32>, vector<8x8xf32> -> vector<8x8xf32>
    %313 = vector.extract_strided_slice %259 {offsets = [0, 24], sizes = [8, 8], strides = [1, 1]} : vector<16x32xf32> to vector<8x8xf32>
    %314 = vector.extract_strided_slice %260 {offsets = [0, 24], sizes = [8, 8], strides = [1, 1]} : vector<16x32xf32> to vector<8x8xf32>
    %315 = vector.extract_strided_slice %261 {offsets = [0, 24], sizes = [8, 8], strides = [1, 1]} : vector<16x32xf32> to vector<8x8xf32>
    %cst_147 = arith.constant dense<0.000000e+00> : vector<8x8xf32>
    %316 = tpu.matmul %313, %314, %cst_147 {dimension_numbers = #tpu.dot_dimension_numbers<[1], [1], [0], [0], [0, 0, 1, 0], [], []>} : vector<8x8xf32>, vector<8x8xf32>, vector<8x8xf32> -> vector<8x8xf32>
    %cst_148 = arith.constant 0.353553385 : f32
    %317 = vector.broadcast %cst_148 : f32 to vector<8x8xf32>
    %318 = arith.mulf %316, %317 : vector<8x8xf32>
    %cst_149 = arith.constant dense<0xFF800000> : vector<8xf32>
    %319 = vector.multi_reduction <maximumf>, %318, %cst_149 [1] : vector<8x8xf32> to vector<8xf32>
    %320 = vector.shape_cast %319 : vector<8xf32> to vector<8x1xf32>
    %321 = vector.broadcast %320 : vector<8x1xf32> to vector<8x8xf32>
    %322 = arith.subf %318, %321 : vector<8x8xf32>
    %323 = math.exp %322 : vector<8x8xf32>
    %cst_150 = arith.constant dense<0.000000e+00> : vector<8xf32>
    %324 = vector.multi_reduction <add>, %323, %cst_150 [1] : vector<8x8xf32> to vector<8xf32>
    %325 = vector.shape_cast %324 : vector<8xf32> to vector<8x1xf32>
    %326 = tpu.reciprocal %325 {approx = true} : vector<8x1xf32> -> vector<8x1xf32>
    %327 = vector.broadcast %326 : vector<8x1xf32> to vector<8x8xf32>
    %328 = arith.mulf %323, %327 : vector<8x8xf32>
    %cst_151 = arith.constant dense<0.000000e+00> : vector<8x8xf32>
    %329 = tpu.matmul %328, %315, %cst_151 {dimension_numbers = #tpu.dot_dimension_numbers<[1], [0], [0], [1], [0, 0, 1, 1], [], []>} : vector<8x8xf32>, vector<8x8xf32>, vector<8x8xf32> -> vector<8x8xf32>
    %330 = tpu.concatenate %278, %295, %312, %329 in 1 : vector<8x8xf32>, vector<8x8xf32>, vector<8x8xf32>, vector<8x8xf32> -> vector<8x32xf32>
    %331 = vector.extract_strided_slice %259 {offsets = [8, 0], sizes = [8, 8], strides = [1, 1]} : vector<16x32xf32> to vector<8x8xf32>
    %332 = vector.extract_strided_slice %260 {offsets = [8, 0], sizes = [8, 8], strides = [1, 1]} : vector<16x32xf32> to vector<8x8xf32>
    %333 = vector.extract_strided_slice %261 {offsets = [8, 0], sizes = [8, 8], strides = [1, 1]} : vector<16x32xf32> to vector<8x8xf32>
    %cst_152 = arith.constant dense<0.000000e+00> : vector<8x8xf32>
    %334 = tpu.matmul %331, %332, %cst_152 {dimension_numbers = #tpu.dot_dimension_numbers<[1], [1], [0], [0], [0, 0, 1, 0], [], []>} : vector<8x8xf32>, vector<8x8xf32>, vector<8x8xf32> -> vector<8x8xf32>
    %cst_153 = arith.constant 0.353553385 : f32
    %335 = vector.broadcast %cst_153 : f32 to vector<8x8xf32>
    %336 = arith.mulf %334, %335 : vector<8x8xf32>
    %cst_154 = arith.constant dense<0xFF800000> : vector<8xf32>
    %337 = vector.multi_reduction <maximumf>, %336, %cst_154 [1] : vector<8x8xf32> to vector<8xf32>
    %338 = vector.shape_cast %337 : vector<8xf32> to vector<8x1xf32>
    %339 = vector.broadcast %338 : vector<8x1xf32> to vector<8x8xf32>
    %340 = arith.subf %336, %339 : vector<8x8xf32>
    %341 = math.exp %340 : vector<8x8xf32>
    %cst_155 = arith.constant dense<0.000000e+00> : vector<8xf32>
    %342 = vector.multi_reduction <add>, %341, %cst_155 [1] : vector<8x8xf32> to vector<8xf32>
    %343 = vector.shape_cast %342 : vector<8xf32> to vector<8x1xf32>
    %344 = tpu.reciprocal %343 {approx = true} : vector<8x1xf32> -> vector<8x1xf32>
    %345 = vector.broadcast %344 : vector<8x1xf32> to vector<8x8xf32>
    %346 = arith.mulf %341, %345 : vector<8x8xf32>
    %cst_156 = arith.constant dense<0.000000e+00> : vector<8x8xf32>
    %347 = tpu.matmul %346, %333, %cst_156 {dimension_numbers = #tpu.dot_dimension_numbers<[1], [0], [0], [1], [0, 0, 1, 1], [], []>} : vector<8x8xf32>, vector<8x8xf32>, vector<8x8xf32> -> vector<8x8xf32>
    %348 = vector.extract_strided_slice %259 {offsets = [8, 8], sizes = [8, 8], strides = [1, 1]} : vector<16x32xf32> to vector<8x8xf32>
    %349 = vector.extract_strided_slice %260 {offsets = [8, 8], sizes = [8, 8], strides = [1, 1]} : vector<16x32xf32> to vector<8x8xf32>
    %350 = vector.extract_strided_slice %261 {offsets = [8, 8], sizes = [8, 8], strides = [1, 1]} : vector<16x32xf32> to vector<8x8xf32>
    %cst_157 = arith.constant dense<0.000000e+00> : vector<8x8xf32>
    %351 = tpu.matmul %348, %349, %cst_157 {dimension_numbers = #tpu.dot_dimension_numbers<[1], [1], [0], [0], [0, 0, 1, 0], [], []>} : vector<8x8xf32>, vector<8x8xf32>, vector<8x8xf32> -> vector<8x8xf32>
    %cst_158 = arith.constant 0.353553385 : f32
    %352 = vector.broadcast %cst_158 : f32 to vector<8x8xf32>
    %353 = arith.mulf %351, %352 : vector<8x8xf32>
    %cst_159 = arith.constant dense<0xFF800000> : vector<8xf32>
    %354 = vector.multi_reduction <maximumf>, %353, %cst_159 [1] : vector<8x8xf32> to vector<8xf32>
    %355 = vector.shape_cast %354 : vector<8xf32> to vector<8x1xf32>
    %356 = vector.broadcast %355 : vector<8x1xf32> to vector<8x8xf32>
    %357 = arith.subf %353, %356 : vector<8x8xf32>
    %358 = math.exp %357 : vector<8x8xf32>
    %cst_160 = arith.constant dense<0.000000e+00> : vector<8xf32>
    %359 = vector.multi_reduction <add>, %358, %cst_160 [1] : vector<8x8xf32> to vector<8xf32>
    %360 = vector.shape_cast %359 : vector<8xf32> to vector<8x1xf32>
    %361 = tpu.reciprocal %360 {approx = true} : vector<8x1xf32> -> vector<8x1xf32>
    %362 = vector.broadcast %361 : vector<8x1xf32> to vector<8x8xf32>
    %363 = arith.mulf %358, %362 : vector<8x8xf32>
    %cst_161 = arith.constant dense<0.000000e+00> : vector<8x8xf32>
    %364 = tpu.matmul %363, %350, %cst_161 {dimension_numbers = #tpu.dot_dimension_numbers<[1], [0], [0], [1], [0, 0, 1, 1], [], []>} : vector<8x8xf32>, vector<8x8xf32>, vector<8x8xf32> -> vector<8x8xf32>
    %365 = vector.extract_strided_slice %259 {offsets = [8, 16], sizes = [8, 8], strides = [1, 1]} : vector<16x32xf32> to vector<8x8xf32>
    %366 = vector.extract_strided_slice %260 {offsets = [8, 16], sizes = [8, 8], strides = [1, 1]} : vector<16x32xf32> to vector<8x8xf32>
    %367 = vector.extract_strided_slice %261 {offsets = [8, 16], sizes = [8, 8], strides = [1, 1]} : vector<16x32xf32> to vector<8x8xf32>
    %cst_162 = arith.constant dense<0.000000e+00> : vector<8x8xf32>
    %368 = tpu.matmul %365, %366, %cst_162 {dimension_numbers = #tpu.dot_dimension_numbers<[1], [1], [0], [0], [0, 0, 1, 0], [], []>} : vector<8x8xf32>, vector<8x8xf32>, vector<8x8xf32> -> vector<8x8xf32>
    %cst_163 = arith.constant 0.353553385 : f32
    %369 = vector.broadcast %cst_163 : f32 to vector<8x8xf32>
    %370 = arith.mulf %368, %369 : vector<8x8xf32>
    %cst_164 = arith.constant dense<0xFF800000> : vector<8xf32>
    %371 = vector.multi_reduction <maximumf>, %370, %cst_164 [1] : vector<8x8xf32> to vector<8xf32>
    %372 = vector.shape_cast %371 : vector<8xf32> to vector<8x1xf32>
    %373 = vector.broadcast %372 : vector<8x1xf32> to vector<8x8xf32>
    %374 = arith.subf %370, %373 : vector<8x8xf32>
    %375 = math.exp %374 : vector<8x8xf32>
    %cst_165 = arith.constant dense<0.000000e+00> : vector<8xf32>
    %376 = vector.multi_reduction <add>, %375, %cst_165 [1] : vector<8x8xf32> to vector<8xf32>
    %377 = vector.shape_cast %376 : vector<8xf32> to vector<8x1xf32>
    %378 = tpu.reciprocal %377 {approx = true} : vector<8x1xf32> -> vector<8x1xf32>
    %379 = vector.broadcast %378 : vector<8x1xf32> to vector<8x8xf32>
    %380 = arith.mulf %375, %379 : vector<8x8xf32>
    %cst_166 = arith.constant dense<0.000000e+00> : vector<8x8xf32>
    %381 = tpu.matmul %380, %367, %cst_166 {dimension_numbers = #tpu.dot_dimension_numbers<[1], [0], [0], [1], [0, 0, 1, 1], [], []>} : vector<8x8xf32>, vector<8x8xf32>, vector<8x8xf32> -> vector<8x8xf32>
    %382 = vector.extract_strided_slice %259 {offsets = [8, 24], sizes = [8, 8], strides = [1, 1]} : vector<16x32xf32> to vector<8x8xf32>
    %383 = vector.extract_strided_slice %260 {offsets = [8, 24], sizes = [8, 8], strides = [1, 1]} : vector<16x32xf32> to vector<8x8xf32>
    %384 = vector.extract_strided_slice %261 {offsets = [8, 24], sizes = [8, 8], strides = [1, 1]} : vector<16x32xf32> to vector<8x8xf32>
    %cst_167 = arith.constant dense<0.000000e+00> : vector<8x8xf32>
    %385 = tpu.matmul %382, %383, %cst_167 {dimension_numbers = #tpu.dot_dimension_numbers<[1], [1], [0], [0], [0, 0, 1, 0], [], []>} : vector<8x8xf32>, vector<8x8xf32>, vector<8x8xf32> -> vector<8x8xf32>
    %cst_168 = arith.constant 0.353553385 : f32
    %386 = vector.broadcast %cst_168 : f32 to vector<8x8xf32>
    %387 = arith.mulf %385, %386 : vector<8x8xf32>
    %cst_169 = arith.constant dense<0xFF800000> : vector<8xf32>
    %388 = vector.multi_reduction <maximumf>, %387, %cst_169 [1] : vector<8x8xf32> to vector<8xf32>
    %389 = vector.shape_cast %388 : vector<8xf32> to vector<8x1xf32>
    %390 = vector.broadcast %389 : vector<8x1xf32> to vector<8x8xf32>
    %391 = arith.subf %387, %390 : vector<8x8xf32>
    %392 = math.exp %391 : vector<8x8xf32>
    %cst_170 = arith.constant dense<0.000000e+00> : vector<8xf32>
    %393 = vector.multi_reduction <add>, %392, %cst_170 [1] : vector<8x8xf32> to vector<8xf32>
    %394 = vector.shape_cast %393 : vector<8xf32> to vector<8x1xf32>
    %395 = tpu.reciprocal %394 {approx = true} : vector<8x1xf32> -> vector<8x1xf32>
    %396 = vector.broadcast %395 : vector<8x1xf32> to vector<8x8xf32>
    %397 = arith.mulf %392, %396 : vector<8x8xf32>
    %cst_171 = arith.constant dense<0.000000e+00> : vector<8x8xf32>
    %398 = tpu.matmul %397, %384, %cst_171 {dimension_numbers = #tpu.dot_dimension_numbers<[1], [0], [0], [1], [0, 0, 1, 1], [], []>} : vector<8x8xf32>, vector<8x8xf32>, vector<8x8xf32> -> vector<8x8xf32>
    %399 = tpu.concatenate %347, %364, %381, %398 in 1 : vector<8x8xf32>, vector<8x8xf32>, vector<8x8xf32>, vector<8x8xf32> -> vector<8x32xf32>
    %400 = tpu.concatenate %330, %399 in 0 : vector<8x32xf32>, vector<8x32xf32> -> vector<16x32xf32>
    %cst_172 = arith.constant dense<0.000000e+00> : vector<16x32xf32>
    %401 = tpu.matmul %400, %237, %cst_172 {dimension_numbers = #tpu.dot_dimension_numbers<[1], [0], [0], [1], [0, 0, 1, 1], [], []>} : vector<16x32xf32>, vector<32x32xf32>, vector<16x32xf32> -> vector<16x32xf32>
    %402 = vector.broadcast %239 : vector<1x32xf32> to vector<16x32xf32>
    %403 = arith.addf %401, %402 : vector<16x32xf32>
    %404 = arith.addf %231, %403 : vector<16x32xf32>
    %cst_173 = arith.constant dense<0.000000e+00> : vector<16xf32>
    %405 = vector.multi_reduction <add>, %404, %cst_173 [1] : vector<16x32xf32> to vector<16xf32>
    %406 = vector.shape_cast %405 : vector<16xf32> to vector<16x1xf32>
    %cst_174 = arith.constant 3.200000e+01 : f32
    %407 = vector.broadcast %cst_174 : f32 to vector<16x1xf32>
    %408 = arith.divf %406, %407 : vector<16x1xf32>
    %409 = vector.broadcast %408 : vector<16x1xf32> to vector<16x32xf32>
    %410 = arith.subf %404, %409 : vector<16x32xf32>
    %411 = arith.mulf %410, %410 : vector<16x32xf32>
    %cst_175 = arith.constant dense<0.000000e+00> : vector<16xf32>
    %412 = vector.multi_reduction <add>, %411, %cst_175 [1] : vector<16x32xf32> to vector<16xf32>
    %413 = vector.shape_cast %412 : vector<16xf32> to vector<16x1xf32>
    %cst_176 = arith.constant 3.200000e+01 : f32
    %414 = vector.broadcast %cst_176 : f32 to vector<16x1xf32>
    %415 = arith.divf %413, %414 : vector<16x1xf32>
    %416 = vector.broadcast %408 : vector<16x1xf32> to vector<16x32xf32>
    %417 = arith.subf %404, %416 : vector<16x32xf32>
    %cst_177 = arith.constant 9.99999974E-6 : f32
    %418 = vector.broadcast %cst_177 : f32 to vector<16x1xf32>
    %419 = arith.addf %415, %418 : vector<16x1xf32>
    %420 = math.rsqrt %419 : vector<16x1xf32>
    %421 = vector.broadcast %420 : vector<16x1xf32> to vector<16x32xf32>
    %422 = arith.mulf %417, %421 : vector<16x32xf32>
    %423 = vector.broadcast %241 : vector<1x32xf32> to vector<16x32xf32>
    %424 = arith.mulf %422, %423 : vector<16x32xf32>
    %425 = vector.broadcast %243 : vector<1x32xf32> to vector<16x32xf32>
    %426 = arith.addf %424, %425 : vector<16x32xf32>
    %cst_178 = arith.constant dense<0.000000e+00> : vector<16x64xf32>
    %427 = tpu.matmul %426, %245, %cst_178 {dimension_numbers = #tpu.dot_dimension_numbers<[1], [0], [0], [1], [0, 0, 1, 1], [], []>} : vector<16x32xf32>, vector<32x64xf32>, vector<16x64xf32> -> vector<16x64xf32>
    %428 = vector.broadcast %247 : vector<1x64xf32> to vector<16x64xf32>
    %429 = arith.addf %427, %428 : vector<16x64xf32>
    %cst_179 = arith.constant 0.000000e+00 : f32
    %430 = vector.broadcast %cst_179 : f32 to vector<16x64xf32>
    %431 = arith.maximumf %429, %430 : vector<16x64xf32>
    %cst_180 = arith.constant dense<0.000000e+00> : vector<16x32xf32>
    %432 = tpu.matmul %431, %249, %cst_180 {dimension_numbers = #tpu.dot_dimension_numbers<[1], [0], [0], [1], [0, 0, 1, 1], [], []>} : vector<16x64xf32>, vector<64x32xf32>, vector<16x32xf32> -> vector<16x32xf32>
    %433 = vector.broadcast %251 : vector<1x32xf32> to vector<16x32xf32>
    %434 = arith.addf %432, %433 : vector<16x32xf32>
    %435 = arith.addf %426, %434 : vector<16x32xf32>
    %cst_181 = arith.constant dense<0.000000e+00> : vector<16xf32>
    %436 = vector.multi_reduction <add>, %435, %cst_181 [1] : vector<16x32xf32> to vector<16xf32>
    %437 = vector.shape_cast %436 : vector<16xf32> to vector<16x1xf32>
    %cst_182 = arith.constant 3.200000e+01 : f32
    %438 = vector.broadcast %cst_182 : f32 to vector<16x1xf32>
    %439 = arith.divf %437, %438 : vector<16x1xf32>
    %440 = vector.broadcast %439 : vector<16x1xf32> to vector<16x32xf32>
    %441 = arith.subf %435, %440 : vector<16x32xf32>
    %442 = arith.mulf %441, %441 : vector<16x32xf32>
    %cst_183 = arith.constant dense<0.000000e+00> : vector<16xf32>
    %443 = vector.multi_reduction <add>, %442, %cst_183 [1] : vector<16x32xf32> to vector<16xf32>
    %444 = vector.shape_cast %443 : vector<16xf32> to vector<16x1xf32>
    %cst_184 = arith.constant 3.200000e+01 : f32
    %445 = vector.broadcast %cst_184 : f32 to vector<16x1xf32>
    %446 = arith.divf %444, %445 : vector<16x1xf32>
    %447 = vector.broadcast %439 : vector<16x1xf32> to vector<16x32xf32>
    %448 = arith.subf %435, %447 : vector<16x32xf32>
    %cst_185 = arith.constant 9.99999974E-6 : f32
    %449 = vector.broadcast %cst_185 : f32 to vector<16x1xf32>
    %450 = arith.addf %446, %449 : vector<16x1xf32>
    %451 = math.rsqrt %450 : vector<16x1xf32>
    %452 = vector.broadcast %451 : vector<16x1xf32> to vector<16x32xf32>
    %453 = arith.mulf %448, %452 : vector<16x32xf32>
    %454 = vector.broadcast %253 : vector<1x32xf32> to vector<16x32xf32>
    %455 = arith.mulf %453, %454 : vector<16x32xf32>
    %456 = vector.broadcast %255 : vector<1x32xf32> to vector<16x32xf32>
    %457 = arith.addf %455, %456 : vector<16x32xf32>
    %458 = vector.extract_strided_slice %457 {offsets = [7, 0], sizes = [1, 32], strides = [1, 1]} : vector<16x32xf32> to vector<1x32xf32>
    %459 = vector.extract_strided_slice %457 {offsets = [15, 0], sizes = [1, 32], strides = [1, 1]} : vector<16x32xf32> to vector<1x32xf32>
    %460 = tpu.concatenate %458, %459 in 0 : vector<1x32xf32>, vector<1x32xf32> -> vector<2x32xf32>
    %c0_186 = arith.constant 0 : index
    %c0_187 = arith.constant 0 : index
    %461 = vector.load %arg16[%c0_186, %c0_187] : memref<2x32xf32, #tpu.memory_space<vmem>>, vector<2x32xf32>
    tpu.vector_store %arg16[%c0_186, %c0_187], %460 {strides = array<i32>} : memref<2x32xf32, #tpu.memory_space<vmem>>, vector<2x32xf32>,
    return
  }
  func.func @transform_0(%arg0: i32) -> (i32, i32) {
    %c0_i32 = arith.constant 0 : i32
    %c0_i32_0 = arith.constant 0 : i32
    %c0_i32_1 = arith.constant 0 : i32
    return %c0_i32, %c0_i32_0 : i32, i32
  }
  func.func @transform_1(%arg0: i32) -> (i32, i32) {
    %c0_i32 = arith.constant 0 : i32
    %c0_i32_0 = arith.constant 0 : i32
    %c0_i32_1 = arith.constant 0 : i32
    return %c0_i32, %c0_i32_0 : i32, i32
  }
  func.func @transform_2(%arg0: i32) -> (i32, i32) {
    %c0_i32 = arith.constant 0 : i32
    %c0_i32_0 = arith.constant 0 : i32
    %c0_i32_1 = arith.constant 0 : i32
    return %c0_i32, %c0_i32_0 : i32, i32
  }
  func.func @transform_3(%arg0: i32) -> (i32, i32, i32) {
    %c0_i32 = arith.constant 0 : i32
    %c0_i32_0 = arith.constant 0 : i32
    %c0_i32_1 = arith.constant 0 : i32
    %c0_i32_2 = arith.constant 0 : i32
    return %c0_i32, %c0_i32_0, %c0_i32_1 : i32, i32, i32
  }
  func.func @transform_4(%arg0: i32) -> (i32, i32, i32) {
    %c0_i32 = arith.constant 0 : i32
    %c0_i32_0 = arith.constant 0 : i32
    %c0_i32_1 = arith.constant 0 : i32
    %c0_i32_2 = arith.constant 0 : i32
    return %c0_i32, %c0_i32_0, %c0_i32_1 : i32, i32, i32
  }
  func.func @transform_5(%arg0: i32) -> (i32, i32, i32) {
    %c0_i32 = arith.constant 0 : i32
    %c0_i32_0 = arith.constant 0 : i32
    %c0_i32_1 = arith.constant 0 : i32
    %c0_i32_2 = arith.constant 0 : i32
    return %c0_i32, %c0_i32_0, %c0_i32_1 : i32, i32, i32
  }
  func.func @transform_6(%arg0: i32) -> (i32, i32, i32) {
    %c0_i32 = arith.constant 0 : i32
    %c0_i32_0 = arith.constant 0 : i32
    %c0_i32_1 = arith.constant 0 : i32
    %c0_i32_2 = arith.constant 0 : i32
    return %c0_i32, %c0_i32_0, %c0_i32_1 : i32, i32, i32
  }
  func.func @transform_7(%arg0: i32) -> (i32, i32, i32) {
    %c0_i32 = arith.constant 0 : i32
    %c0_i32_0 = arith.constant 0 : i32
    %c0_i32_1 = arith.constant 0 : i32
    %c0_i32_2 = arith.constant 0 : i32
    return %c0_i32, %c0_i32_0, %c0_i32_1 : i32, i32, i32
  }
  func.func @transform_8(%arg0: i32) -> (i32, i32, i32) {
    %c0_i32 = arith.constant 0 : i32
    %c0_i32_0 = arith.constant 0 : i32
    %c0_i32_1 = arith.constant 0 : i32
    %c0_i32_2 = arith.constant 0 : i32
    return %c0_i32, %c0_i32_0, %c0_i32_1 : i32, i32, i32
  }
  func.func @transform_9(%arg0: i32) -> (i32, i32, i32) {
    %c0_i32 = arith.constant 0 : i32
    %c0_i32_0 = arith.constant 0 : i32
    %c0_i32_1 = arith.constant 0 : i32
    %c0_i32_2 = arith.constant 0 : i32
    return %c0_i32, %c0_i32_0, %c0_i32_1 : i32, i32, i32
  }
  func.func @transform_10(%arg0: i32) -> (i32, i32, i32) {
    %c0_i32 = arith.constant 0 : i32
    %c0_i32_0 = arith.constant 0 : i32
    %c0_i32_1 = arith.constant 0 : i32
    %c0_i32_2 = arith.constant 0 : i32
    return %c0_i32, %c0_i32_0, %c0_i32_1 : i32, i32, i32
  }
  func.func @transform_11(%arg0: i32) -> (i32, i32, i32) {
    %c0_i32 = arith.constant 0 : i32
    %c0_i32_0 = arith.constant 0 : i32
    %c0_i32_1 = arith.constant 0 : i32
    %c0_i32_2 = arith.constant 0 : i32
    return %c0_i32, %c0_i32_0, %c0_i32_1 : i32, i32, i32
  }
  func.func @transform_12(%arg0: i32) -> (i32, i32, i32) {
    %c0_i32 = arith.constant 0 : i32
    %c0_i32_0 = arith.constant 0 : i32
    %c0_i32_1 = arith.constant 0 : i32
    %c0_i32_2 = arith.constant 0 : i32
    return %c0_i32, %c0_i32_0, %c0_i32_1 : i32, i32, i32
  }
  func.func @transform_13(%arg0: i32) -> (i32, i32, i32) {
    %c0_i32 = arith.constant 0 : i32
    %c0_i32_0 = arith.constant 0 : i32
    %c0_i32_1 = arith.constant 0 : i32
    %c0_i32_2 = arith.constant 0 : i32
    return %c0_i32, %c0_i32_0, %c0_i32_1 : i32, i32, i32
  }
  func.func @transform_14(%arg0: i32) -> (i32, i32, i32) {
    %c0_i32 = arith.constant 0 : i32
    %c0_i32_0 = arith.constant 0 : i32
    %c0_i32_1 = arith.constant 0 : i32
    %c0_i32_2 = arith.constant 0 : i32
    return %c0_i32, %c0_i32_0, %c0_i32_1 : i32, i32, i32
  }
  func.func @transform_15(%arg0: i32) -> (i32, i32) {
    %c0_i32 = arith.constant 0 : i32
    %c0_i32_0 = arith.constant 0 : i32
    %c0_i32_1 = arith.constant 0 : i32
    return %c0_i32, %c0_i32_0 : i32, i32
  }
}

</mosaic_0001>

<bundles_post_ra>
// kernel: camera_pose_forward.1
= control target key start
LH: loop header
LB: loop body
LE: loop exit
PB: predicated region body
PF: predicated region fallthrough
CT: control target
= control target key end

     0   :  { %s5448_s0 = inlined_call_operand.hbm [shape: f32[16,16], index: 0, kind: input, shape index: {}]   ;;  %s5449_s1 = inlined_call_operand.vmem [shape: f32[16,32], index: 1, kind: input, shape index: {}]   ;;  %s5450_s2 = inlined_call_operand.vmem [shape: f32[1,32], index: 2, kind: input, shape index: {}]   ;;  %s5451_s3 = inlined_call_operand.vmem [shape: f32[2,32,96], index: 3, kind: input, shape index: {}]   ;;  %s5452_s4 = inlined_call_operand.vmem [shape: f32[2,1,96], index: 4, kind: input, shape index: {}]   ;;  %s5453_s5 = inlined_call_operand.vmem [shape: f32[2,32,32], index: 5, kind: input, shape index: {}]   ;;  %s5454_s6 = inlined_call_operand.vmem [shape: f32[2,1,32], index: 6, kind: input, shape index: {}]   ;;  %s5455_s7 = inlined_call_operand.vmem [shape: f32[2,1,32], index: 7, kind: input, shape index: {}]   ;;  %s5456_s8 = inlined_call_operand.hbm [shape: f32[2,1,32], index: 8, kind: input, shape index: {}]   ;;  %s5457_s9 = inlined_call_operand.vmem [shape: f32[2,32,64], index: 9, kind: input, shape index: {}]   ;;  %s5458_s10 = inlined_call_operand.hbm [shape: f32[2,1,64], index: 10, kind: input, shape index: {}]   ;;  %s5459_s11 = inlined_call_operand.vmem [shape: f32[2,64,32], index: 11, kind: input, shape index: {}]   ;;  %s5460_s12 = inlined_call_operand.hbm [shape: f32[2,1,32], index: 12, kind: input, shape index: {}]   ;;  %s5461_s13 = inlined_call_operand.vmem [shape: f32[2,1,32], index: 13, kind: input, shape index: {}]   ;;  %s5462_s14 = inlined_call_operand.hbm [shape: f32[2,1,32], index: 14, kind: input, shape index: {}]   ;;  %s5463_s15 = inlined_call_operand.hbm [shape: f32[2,32], index: 15, kind: output, shape index: {}]  }
   0x1   :  { %5467 = sst [smem:[#allocation16_spill]] %s5463_s15 }
   0x2   :  { %20 = vsyncpa [#allocation3], 0 }
   0x3   :  { %21 = vsyncpa [#allocation6], 0 }
   0x4   :  { %22 = vsyncpa [#allocation9], 0 }
   0x5   :  { %23 = vsyncpa [#allocation4], 0  ;;  %s4730_s18 = smov [#allocation5]   ;;  %s4590_s22 = scalar_lea.hbm %s5456_s8, 32 }
   0x6   :  { %s55_s19 = sshll.u32 %s4730_s18, 4  ;;  %p4591_p0 = scmp.ne.s32.totalorder %s5456_s8, %s4590_s22  ;;  %s56_s19 = int_to_ptr.vmem [resolvable:$true] %s55_s19 }
   0x7   :  { %p4594_p1 = scmp.lt.u32.totalorder %s4590_s22, %s5456_s8 }
   0x9   :  { %p4596_p2 = pnand %p4594_p1, %p4591_p0 }
   0xb   :  { %4599 = shalt.err (!%p4596_p2)
}
   0xc   :  { %s4600_s27 = scalar_lea.vmem %s56_s19, 32  ;;  %p4605_p4 = scmp.lt.s32.totalorder %s56_s19, %s56_s19 }
   0xd   :  { %p4601_p3 = scmp.ne.s32.totalorder %s56_s19, %s4600_s27  ;;  %p4606_p5 = scmp.lt.s32.totalorder %s4600_s27, %s4600_s27 }
   0xf   :  { %p4607_p6 = por %p4606_p5, %p4605_p4 }
  0x11   :  { %p4608_p7 = pnand %p4607_p6, %p4601_p3 }
  0x13   :  { %4611 = shalt.err (!%p4608_p7)
}
  0x14   :  { %s4731_s28 = smov 16   ;;  %s4732_s29 = smov 1  }
  0x15   :  { %61 = dma.hbm_to_vmem [thread:$0]  %s5456_s8, 32, %s56_s19, [#allocation6], %s4731_s28, %s4731_s28, %s4732_s29  }
  0x16   :  { %s4733_s17 = smov [#allocation8]   ;;  %s4734_s20 = smov [#allocation2]  }
  0x17   :  { %s83_s18 = sshll.u32 %s4733_s17, 4  ;;  %s29_s21 = sshll.u32 %s4734_s20, 4  ;;  %s84_s18 = int_to_ptr.vmem [resolvable:$true] %s83_s18  ;;  %s30_s21 = int_to_ptr.vmem [resolvable:$true] %s29_s21 }
  0x18   :  { %s4612_s24 = scalar_lea.hbm %s5460_s12, 32 }
  0x19   :  { %p4613_p8 = scmp.ne.s32.totalorder %s5460_s12, %s4612_s24  ;;  %p4616_p9 = scmp.lt.u32.totalorder %s4612_s24, %s5460_s12 }
  0x1b   :  { %p4618_p10 = pnand %p4616_p9, %p4613_p8 }
  0x1d   :  { %4621 = shalt.err (!%p4618_p10)
}
  0x1e   :  { %s4622_s8 = scalar_lea.vmem %s84_s18, 32  ;;  %p4627_p12 = scmp.lt.s32.totalorder %s84_s18, %s84_s18 }
  0x1f   :  { %p4623_p11 = scmp.ne.s32.totalorder %s84_s18, %s4622_s8  ;;  %p4628_p13 = scmp.lt.s32.totalorder %s4622_s8, %s4622_s8 }
  0x21   :  { %p4629_p0 = por %p4628_p13, %p4627_p12 }
  0x23   :  { %p4630_p1 = pnand %p4629_p0, %p4623_p11 }
  0x25   :  { %4633 = shalt.err (!%p4630_p1)
}
  0x26   :  { %89 = dma.hbm_to_vmem [thread:$0]  %s5460_s12, 32, %s84_s18, [#allocation9], %s4731_s28, %s4731_s28, %s4732_s29  }
  0x27   :  { %s4634_s17 = scalar_lea.hbm %s5448_s0, 256 }
  0x28   :  { %p4635_p2 = scmp.ne.s32.totalorder %s5448_s0, %s4634_s17  ;;  %p4638_p3 = scmp.lt.u32.totalorder %s4634_s17, %s5448_s0 }
  0x2a   :  { %p4640_p4 = pnand %p4638_p3, %p4635_p2 }
  0x2c   :  { %4643 = shalt.err (!%p4640_p4)
}
  0x2d   :  { %s4644_s25 = scalar_lea.vmem %s30_s21, 256  ;;  %p4649_p6 = scmp.lt.s32.totalorder %s30_s21, %s30_s21 }
  0x2e   :  { %p4645_p5 = scmp.ne.s32.totalorder %s30_s21, %s4644_s25  ;;  %p4650_p7 = scmp.lt.s32.totalorder %s4644_s25, %s4644_s25 }
  0x30   :  { %p4651_p8 = por %p4650_p7, %p4649_p6 }
  0x32   :  { %p4652_p9 = pnand %p4651_p8, %p4645_p5 }
  0x34   :  { %4655 = shalt.err (!%p4652_p9)
}
  0x35   :  { %s4735_s12 = smov 128   ;;  %s4736_s18 = smov 8  }
  0x36   :  { %35 = dma.hbm_to_vmem [thread:$0]  %s5448_s0, 256, %s30_s21, [#allocation3], %s4735_s12, %s4735_s12, %s4736_s18  }
  0x37   :  { %s4737_s8 = smov [#allocation7]   ;;  %s4738_s30 = smov [#allocation10]  }
  0x38   :  { %s69_s19 = sshll.u32 %s4737_s8, 4  ;;  %s97_s16 = sshll.u32 %s4738_s30, 4  ;;  %s70_s19 = int_to_ptr.vmem [resolvable:$true] %s69_s19  ;;  %s98_s16 = int_to_ptr.vmem [resolvable:$true] %s97_s16 }
  0x39   :  { %s4656_s20 = scalar_lea.hbm %s5458_s10, 32 }
  0x3a   :  { %p4657_p10 = scmp.ne.s32.totalorder %s5458_s10, %s4656_s20  ;;  %p4660_p11 = scmp.lt.u32.totalorder %s4656_s20, %s5458_s10 }
  0x3c   :  { %p4662_p12 = pnand %p4660_p11, %p4657_p10 }
  0x3e   :  { %4665 = shalt.err (!%p4662_p12)
}
  0x3f   :  { %s4666_s0 = scalar_lea.vmem %s70_s19, 32  ;;  %p4671_p0 = scmp.lt.s32.totalorder %s70_s19, %s70_s19 }
  0x40   :  { %p4667_p13 = scmp.ne.s32.totalorder %s70_s19, %s4666_s0  ;;  %p4672_p1 = scmp.lt.s32.totalorder %s4666_s0, %s4666_s0 }
  0x42   :  { %p4673_p2 = por %p4672_p1, %p4671_p0 }
  0x44   :  { %p4674_p3 = pnand %p4673_p2, %p4667_p13 }
  0x46   :  { %4677 = shalt.err (!%p4674_p3)
}
  0x47   :  { %75 = dma.hbm_to_vmem [thread:$0]  %s5458_s10, 32, %s70_s19, [#allocation6], %s4731_s28, %s4731_s28, %s4732_s29  }
  0x48   :  { %s4678_s8 = scalar_lea.hbm %s5462_s14, 32 }
  0x49   :  { %p4679_p4 = scmp.ne.s32.totalorder %s5462_s14, %s4678_s8  ;;  %p4682_p5 = scmp.lt.u32.totalorder %s4678_s8, %s5462_s14 }
  0x4b   :  { %p4684_p6 = pnand %p4682_p5, %p4679_p4 }
  0x4d   :  { %4687 = shalt.err (!%p4684_p6)
}
  0x4e   :  { %s4688_s22 = scalar_lea.vmem %s98_s16, 32  ;;  %p4693_p8 = scmp.lt.s32.totalorder %s98_s16, %s98_s16 }
  0x4f   :  { %p4689_p7 = scmp.ne.s32.totalorder %s98_s16, %s4688_s22  ;;  %p4694_p9 = scmp.lt.s32.totalorder %s4688_s22, %s4688_s22 }
  0x51   :  { %p4695_p10 = por %p4694_p9, %p4693_p8 }
  0x53   :  { %p4696_p11 = pnand %p4695_p10, %p4689_p7 }
  0x55   :  { %4699 = shalt.err (!%p4696_p11)
}
  0x56   :  { %103 = dma.hbm_to_vmem [thread:$0]  %s5462_s14, 32, %s98_s16, [#allocation9], %s4731_s28, %s4731_s28, %s4732_s29  }
  0x57   :  { %4722 = dma.done.wait [#allocation3], 256  }
  0x58   :  { %4723 = vsyncadd [#allocation3], 4294967040 }
  0x59   :  { %4724 = dma.done.wait [#allocation6], 64  }
  0x5a   :  { %4725 = vsyncadd [#allocation6], 4294967232 }
  0x5b   :  { %4726 = dma.done.wait [#allocation9], 64  }
  0x5c   :  { %4727 = vsyncadd [#allocation9], 4294967232  ;;  %vm130_vm0 = vcmask 130048   ;;  %v121_v0 = vld [vmem:[%s5449_s1] sm:$0xff]  ;;  %v122_v1 = vld [vmem:[%s5449_s1 + $0x8] sm:$0xff]  ;;  %vm246_vm1 = vcmask 261120  }
  0x5d   :  { %v119_v2 = vld [vmem:[#allocation2] sm:$0xff]  ;;  %v4402_v3 = vpack.c.bf16 %v122_v1, %v121_v0  ;;  %v213_v5 = vld [vmem:[%s5451_s3 + $0x8] sm:$0xff]  ;;  %v214_v8 = vld [vmem:[%s5451_s3 + $0x10] sm:$0xff]  ;;  %v4739_v16 = vmov 0.0   ;;  %vm4740_vm2 = vmmov 0   ;;  %s4741_s17 = smov 64  }
  0x5e   :  { %4135 = vmatprep.mubr.msk.f32.mxu0 %vm130_vm0, %v119_v2  ;;  %v212_v4 = vld [vmem:[%s5451_s3] sm:$0xff]  ;;  %v120_v7 = vld [vmem:[#allocation2 + $0x8] sm:$0xff]  ;;  %v215_v9 = vld [vmem:[%s5451_s3 + $0x18] sm:$0xff]  ;;  %4154 = vmatprep.subr.mxu1 %v4739_v16  ;;  %s4742_s20 = smov 96   ;;  %s4743_s22 = smov 88   ;;  %vm331_vm3 = vcmask 64512  }
  0x5f   :  { %v4406_v6 = vpack.c.bf16 %v213_v5, %v212_v4  ;;  %4403 = vmatprep.subr.bf16.mxu0 %v4402_v3  ;;  %v4410_v10 = vpack.c.bf16 %v215_v9, %v214_v8  ;;  %v3900_v11 = vld [vmem:[%s5450_s2] ss:$0 sm:$0xff]  ;;  %4156 = vmatprep.mubr.msk.f32.mxu1 %vm4740_vm2, %v4739_v16  ;;  %s4744_s10 = smov 120   ;;  %s4745_s19 = smov 80   ;;  %vm1006_vm4 = vcmask 195584   ;;  %vm1913_vm5 = vcmask 523264  }
  0x60   :  { %4405 = vmatpush3.bf16.msra.mxu0 %v4402_v3  ;;  %v3903_v17 = vld [vmem:[%s5452_s4] ss:$0 sm:$0xff]  ;;  %s4746_s23 = smov 112   ;;  %s4747_s24 = smov 104   ;;  %vm3879_vm6 = vcmask 1040384   ;;  %vm3881_vm7 = vcmask 254976  }
  0x61   :  { %4407 = vmatprep.subr.bf16.mxu0 %v4406_v6  ;;  %s4748_s25 = smov 72   ;;  %s4749_s0 = smov 48  }
  0x62   :  { %s4750_s14 = smov 40   ;;  %s4751_s29 = smov 56  }
  0x63   :  { %4136 = vmatmul.mubr.msk.f32.vlgmr.msra.gmra.mrb[0].mxu0 %vm130_vm0, %v120_v7  ;;  %s5465_s2 = smov 24  }
  0x64   :  { %4409 = vmatpush3.bf16.msra.mxu0 %v4406_v6 }
  0x65   :  { %4411 = vmatprep.subr.bf16.mxu0 %v4410_v10 }
  0x68   :  { %4413 = vmatpush3.bf16.msra.mxu0 %v4410_v10 }
  0x69   :  { %4149 = vmatprep.subr.mxu0 %v4739_v16 }
 0x136   :  { %v4137_v12 = vpop.f32.mrb[0].mxu0 }
 0x137   :  { %v203_v13 = vpop.f32.mrb[1].mxu0  ;;  %v4932_v15 = vadd.f32 %v4137_v12, %v3900_v11 }
 0x138   :  { %v4930_v14 = vadd.f32 %v3900_v11, %v203_v13 }
 0x13a   :  { %4146 = vmatprep.mubr.msk.f32.mxu0 %vm246_vm1, %v4930_v14 }
 0x13b   :  { %4147 = vmatmul.mubr.msk.f32.vlgmr.msra.gmra.mrb[2].mxu0 %vm246_vm1, %v4932_v15 }
 0x13c   :  { %4151 = vmatprep.mubr.msk.f32.mxu0 %vm4740_vm2, %v4739_v16 }
 0x20e   :  { %v4148_v18 = vpop.f32.mrb[2].mxu0 }
 0x20f   :  { %v4947_v19 = vadd.f32 %v4148_v18, %v3903_v17  ;;  %v319_v20 = vpop.f32.mrb[3].mxu0 }
 0x210   :  { %v4949_v21 = vadd.f32 %v3903_v17, %v319_v20 }
 0x212   :  { %418 = vrot.lane.b32.xlu1 %v4949_v21, %s4741_s17  ;;  %329 = vrot.lane.b32.xlu0 %v4949_v21, %s4742_s20 }
 0x216   :  { %496 = vrot.lane.b32.xlu1 %v4949_v21, %s4743_s22 }
 0x21a   :  { %494 = vrot.lane.b32.xlu1 %v4949_v21, %s4744_s10 }
 0x21e   :  { %662 = vrot.lane.b32.xlu1 %v4949_v21, %s4745_s19 }
 0x222   :  { %660 = vrot.lane.b32.xlu1 %v4949_v21, %s4746_s23 }
 0x226   :  { %826 = vrot.lane.b32.xlu1 %v4949_v21, %s4747_s24 }
 0x284   :  { %v419_v22 = vpop.permute.xlu1 %418  ;;  %v330_v23 = vpop.permute.xlu0 %329 }
 0x285   :  { %4150 = vmatpush3.xpose.msk.msra.mxu0 %vm331_vm3, %v330_v23  ;;  %4155 = vmatpush3.msra.mxu1 %v419_v22 }
 0x286   :  { %4159 = vmatprep.subr.mxu1 %v4739_v16  ;;  %4164 = vmatprep.subr.mxu0 %v4739_v16 }
 0x288   :  { %4152 = vmatmul.mubr.msk.f32.vlgmr.msra.gmra.mrb[4].mxu0 %vm331_vm3, %v4949_v21  ;;  %v497_v33 = vpop.permute.xlu1 %496 }
 0x289   :  { %4166 = vmatprep.mubr.msk.f32.mxu0 %vm4740_vm2, %v4739_v16 }
 0x28c   :  { %v495_v34 = vpop.permute.xlu1 %494 }
 0x290   :  { %v663_v35 = vpop.permute.xlu1 %662 }
 0x294   :  { %v661_v36 = vpop.permute.xlu1 %660 }
 0x298   :  { %v827_v37 = vpop.permute.xlu1 %826 }
 0x35b   :  { %v402_v24 = vpop.f32.mrb[4].mxu0 }
 0x35c   :  { %v406_v25 = vmul.f32 0.35355338, %v402_v24  ;;  %v4153_v26 = vpop.f32.mrb[5].mxu0 }
 0x35e   :  { %v407_v27 = vsel %vm331_vm3, %v406_v25, -inf }
 0x35f   :  { %408 = vmax.xlane.f32.xlu0 %v407_v27 }
 0x375   :  { %828 = vrot.lane.b32.xlu0 %v4949_v21, %s4748_s25 }
 0x379   :  { %1339 = vrot.lane.b32.xlu0 %v4947_v19, %s4746_s23 }
 0x37d   :  { %1505 = vrot.lane.b32.xlu0 %v4947_v19, %s4747_s24 }
 0x3ec   :  { %v409_v28 = vpop.xlane.xlu0 %408 }
 0x3ed   :  { %v410_v29 = vsub.f32 %v406_v25, %v409_v28 }
 0x3ef   :  { %v411_v30 = vmul.f32 1.442695, %v410_v29 }
 0x3f0   :  { %v829_v43 = vpop.permute.xlu0 %828 }
 0x3f1   :  { %4510 = vpow2.f32 %v411_v30 }
 0x3f4   :  { %v1340_v46 = vpop.permute.xlu0 %1339 }
 0x3f8   :  { %v1506_v48 = vpop.permute.xlu0 %1505 }
 0x3fb   :  { %v4511_v31 = vpop.eup %4510 }
 0x3fc   :  { %v413_v32 = vsel %vm331_vm3, %v4511_v31, 0.0 }
 0x3fd   :  { %414 = vadd.xlane.f32.xlu1 %v413_v32 }
 0x40e   :  { %1009 = vrot.lane.b32.xlu1 %v4947_v19, %s4742_s20 }
 0x412   :  { %1175 = vrot.lane.b32.xlu1 %v4947_v19, %s4743_s22 }
 0x416   :  { %1173 = vrot.lane.b32.xlu1 %v4947_v19, %s4744_s10 }
 0x41a   :  { %1341 = vrot.lane.b32.xlu1 %v4947_v19, %s4745_s19 }
 0x41e   :  { %1507 = vrot.lane.b32.xlu1 %v4947_v19, %s4748_s25 }
 0x48a   :  { %v415_v38 = vpop.xlane.xlu1 %414 }
 0x48b   :  { %4512 = vrcp.f32 %v415_v38 }
 0x48e   :  { %v1010_v41 = vpop.permute.xlu1 %1009 }
 0x492   :  { %v1176_v42 = vpop.permute.xlu1 %1175 }
 0x495   :  { %v4513_v39 = vpop.eup %4512 }
 0x496   :  { %v417_v40 = vmul.f32 %v4513_v39, %v4511_v31  ;;  %v1174_v44 = vpop.permute.xlu1 %1173 }
 0x498   :  { %4157 = vmatmul.mubr.msk.f32.vlgmr.msra.gmra.mrb[0].mxu1 %vm331_vm3, %v417_v40 }
 0x499   :  { %4160 = vmatpush3.xpose.msk.msra.mxu1 %vm331_vm3, %v497_v33  ;;  %4161 = vmatprep.mubr.msk.f32.mxu1 %vm4740_vm2, %v4739_v16 }
 0x49a   :  { %4169 = vmatprep.subr.mxu1 %v4739_v16  ;;  %v1342_v45 = vpop.permute.xlu1 %1341 }
 0x49c   :  { %4162 = vmatmul.mubr.msk.f32.vlgmr.msra.gmra.mrb[2].mxu1 %vm331_vm3, %v495_v34 }
 0x49d   :  { %4170 = vmatpush3.xpose.msk.msra.mxu1 %vm331_vm3, %v663_v35  ;;  %4171 = vmatprep.mubr.msk.f32.mxu1 %vm4740_vm2, %v4739_v16 }
 0x49e   :  { %4179 = vmatprep.subr.mxu1 %v4739_v16  ;;  %v1508_v47 = vpop.permute.xlu1 %1507 }
 0x4a0   :  { %4172 = vmatmul.mubr.msk.f32.vlgmr.msra.gmra.mrb[4].mxu1 %vm331_vm3, %v661_v36 }
 0x4a1   :  { %4180 = vmatpush3.xpose.msk.msra.mxu1 %vm331_vm3, %v829_v43  ;;  %4181 = vmatprep.mubr.msk.f32.mxu1 %vm4740_vm2, %v4739_v16 }
 0x4a2   :  { %4189 = vmatprep.subr.mxu1 %v4739_v16 }
 0x4a4   :  { %4182 = vmatmul.mubr.msk.f32.vlgmr.msra.gmra.mrb[6].mxu1 %vm331_vm3, %v827_v37 }
 0x4a5   :  { %4190 = vmatpush3.xpose.msk.msra.mxu1 %vm331_vm3, %v1010_v41  ;;  %4191 = vmatprep.mubr.msk.f32.mxu1 %vm4740_vm2, %v4739_v16 }
 0x4a6   :  { %4199 = vmatprep.subr.mxu1 %v4739_v16 }
 0x4a8   :  { %4192 = vmatmul.mubr.msk.f32.vlgmr.msra.gmra.mrb[8].mxu1 %vm331_vm3, %v4947_v19 }
 0x4a9   :  { %4200 = vmatpush3.xpose.msk.msra.mxu1 %vm331_vm3, %v1176_v42  ;;  %4201 = vmatprep.mubr.msk.f32.mxu1 %vm4740_vm2, %v4739_v16 }
 0x4aa   :  { %4209 = vmatprep.subr.mxu1 %v4739_v16 }
 0x4ac   :  { %4202 = vmatmul.mubr.msk.f32.vlgmr.msra.gmra.mrb[10].mxu1 %vm331_vm3, %v1174_v44 }
 0x4ad   :  { %4210 = vmatpush3.xpose.msk.msra.mxu1 %vm331_vm3, %v1342_v45  ;;  %4211 = vmatprep.mubr.msk.f32.mxu1 %vm4740_vm2, %v4739_v16 }
 0x4ae   :  { %4219 = vmatprep.subr.mxu1 %v4739_v16 }
 0x4b0   :  { %4212 = vmatmul.mubr.msk.f32.vlgmr.msra.gmra.mrb[12].mxu1 %vm331_vm3, %v1340_v46 }
 0x4b1   :  { %4220 = vmatpush3.xpose.msk.msra.mxu1 %vm331_vm3, %v1508_v47  ;;  %4221 = vmatprep.mubr.msk.f32.mxu1 %vm4740_vm2, %v4739_v16 }
 0x4b4   :  { %4222 = vmatmul.mubr.msk.f32.vlgmr.msra.gmra.mrb[14].mxu1 %vm331_vm3, %v1506_v48 }
 0x56b   :  { %v5026_v49 = vpop.f32.mrb[0].mxu1 }
 0x56c   :  { %v4158_v50 = vpop.f32.mrb[1].mxu1 }
 0x56f   :  { %v568_v51 = vpop.f32.mrb[2].mxu1 }
 0x570   :  { %v572_v52 = vmul.f32 0.35355338, %v568_v51  ;;  %v4163_v53 = vpop.f32.mrb[3].mxu1 }
 0x572   :  { %v573_v54 = vsel %vm331_vm3, %v572_v52, -inf }
 0x573   :  { %574 = vmax.xlane.f32.xlu1 %v573_v54  ;;  %v734_v55 = vpop.f32.mrb[4].mxu1 }
 0x574   :  { %v738_v56 = vmul.f32 0.35355338, %v734_v55  ;;  %v4173_v57 = vpop.f32.mrb[5].mxu1 }
 0x576   :  { %v739_v58 = vsel %vm331_vm3, %v738_v56, -inf }
 0x577   :  { %740 = vmax.xlane.f32.xlu0 %v739_v58  ;;  %v900_v59 = vpop.f32.mrb[6].mxu1 }
 0x578   :  { %v904_v60 = vmul.f32 0.35355338, %v900_v59  ;;  %v4183_v61 = vpop.f32.mrb[7].mxu1 }
 0x57a   :  { %v905_v62 = vsel %vm331_vm3, %v904_v60, -inf }
 0x57b   :  { %906 = vmax.xlane.f32.xlu0 %v905_v62  ;;  %v1081_v63 = vpop.f32.mrb[8].mxu1 }
 0x57c   :  { %v1085_v0 = vmul.f32 0.35355338, %v1081_v63  ;;  %v4193_v1 = vpop.f32.mrb[9].mxu1 }
 0x57e   :  { %v1086_v2 = vsel %vm331_vm3, %v1085_v0, -inf }
 0x57f   :  { %1087 = vmax.xlane.f32.xlu1 %v1086_v2  ;;  %v1247_v3 = vpop.f32.mrb[10].mxu1 }
 0x580   :  { %v1251_v4 = vmul.f32 0.35355338, %v1247_v3  ;;  %v4203_v5 = vpop.f32.mrb[11].mxu1 }
 0x582   :  { %v1252_v6 = vsel %vm331_vm3, %v1251_v4, -inf }
 0x583   :  { %1253 = vmax.xlane.f32.xlu0 %v1252_v6  ;;  %v1413_v7 = vpop.f32.mrb[12].mxu1 }
 0x584   :  { %v1417_v8 = vmul.f32 0.35355338, %v1413_v7  ;;  %v4213_v9 = vpop.f32.mrb[13].mxu1 }
 0x586   :  { %v1418_v10 = vsel %vm331_vm3, %v1417_v8, -inf }
 0x587   :  { %1419 = vmax.xlane.f32.xlu1 %v1418_v10  ;;  %v1579_v11 = vpop.f32.mrb[14].mxu1 }
 0x588   :  { %v1583_v12 = vmul.f32 0.35355338, %v1579_v11  ;;  %v4223_v13 = vpop.f32.mrb[15].mxu1 }
 0x58a   :  { %v1584_v17 = vsel %vm331_vm3, %v1583_v12, -inf }
 0x58b   :  { %1585 = vmax.xlane.f32.xlu0 %v1584_v17 }
 0x598   :  { %750 = vrot.lane.b32.xlu1 %v4949_v21, %s4749_s0 }
 0x59c   :  { %916 = vrot.lane.b32.xlu1 %v4949_v21, %s4750_s14 }
 0x5a1   :  { %584 = vrot.lane.b32.xlu0 %v4949_v21, %s4751_s29 }
 0x600   :  { %v575_v18 = vpop.xlane.xlu1 %574 }
 0x601   :  { %v576_v20 = vsub.f32 %v572_v52, %v575_v18 }
 0x603   :  { %v577_v22 = vmul.f32 1.442695, %v576_v20 }
 0x604   :  { %v741_v23 = vpop.xlane.xlu0 %740 }
 0x605   :  { %4514 = vpow2.f32 %v577_v22  ;;  %v742_v24 = vsub.f32 %v738_v56, %v741_v23 }
 0x607   :  { %v743_v25 = vmul.f32 1.442695, %v742_v24 }
 0x608   :  { %v907_v27 = vpop.xlane.xlu0 %906 }
 0x609   :  { %4516 = vpow2.f32 %v743_v25  ;;  %v908_v33 = vsub.f32 %v904_v60, %v907_v27  ;;  %v217_v27 = vld [vmem:[%s5453_s5] sm:$0xff] }
 0x60b   :  { %v909_v36 = vmul.f32 1.442695, %v908_v33 }
 0x60c   :  { %v1088_v34 = vpop.xlane.xlu1 %1087 }
 0x60d   :  { %v1089_v35 = vsub.f32 %v1085_v0, %v1088_v34  ;;  %4518 = vpow2.f32 %v909_v36 }
 0x60f   :  { %v4515_v26 = vpop.eup %4514  ;;  %v1090_v39 = vmul.f32 1.442695, %v1089_v35 }
 0x610   :  { %v579_v28 = vsel %vm331_vm3, %v4515_v26, 0.0  ;;  %v1254_v30 = vpop.xlane.xlu0 %1253 }
 0x611   :  { %580 = vadd.xlane.f32.xlu1 %v579_v28  ;;  %v1255_v37 = vsub.f32 %v1251_v4, %v1254_v30  ;;  %4520 = vpow2.f32 %v1090_v39  ;;  %v218_v28 = vld [vmem:[%s5453_s5 + $0x8] sm:$0xff] }
 0x613   :  { %v4517_v29 = vpop.eup %4516  ;;  %v1256_v41 = vmul.f32 1.442695, %v1255_v37 }
 0x614   :  { %v745_v31 = vsel %vm331_vm3, %v4517_v29, 0.0  ;;  %v1420_v38 = vpop.xlane.xlu1 %1419 }
 0x615   :  { %746 = vadd.xlane.f32.xlu0 %v745_v31  ;;  %v1421_v40 = vsub.f32 %v1417_v8, %v1420_v38  ;;  %4522 = vpow2.f32 %v1256_v41  ;;  %v219_v31 = vld [vmem:[%s5453_s5 + $0x10] sm:$0xff] }
 0x617   :  { %v1422_v43 = vmul.f32 1.442695, %v1421_v40  ;;  %v4519_v45 = vpop.eup %4518 }
 0x618   :  { %v1586_v32 = vpop.xlane.xlu0 %1585  ;;  %v911_v47 = vsel %vm331_vm3, %v4519_v45, 0.0  ;;  %v751_v56 = vpop.permute.xlu1 %750 }
 0x619   :  { %v1587_v42 = vsub.f32 %v1583_v12, %v1586_v32  ;;  %4524 = vpow2.f32 %v1422_v43  ;;  %v220_v32 = vld [vmem:[%s5453_s5 + $0x18] sm:$0xff] }
 0x61a   :  { %v4418_v33 = vpack.c.bf16 %v220_v32, %v219_v31 }
 0x61b   :  { %v1588_v44 = vmul.f32 1.442695, %v1587_v42  ;;  %v4521_v46 = vpop.eup %4520 }
 0x61c   :  { %v585_v21 = vpop.permute.xlu0 %584  ;;  %v1092_v51 = vsel %vm331_vm3, %v4521_v46, 0.0  ;;  %v917_v57 = vpop.permute.xlu1 %916 }
 0x61d   :  { %4165 = vmatpush3.msra.mxu0 %v585_v21  ;;  %4526 = vpow2.f32 %v1588_v44 }
 0x61e   :  { %4174 = vmatprep.subr.mxu0 %v4739_v16 }
 0x61f   :  { %v4523_v48 = vpop.eup %4522 }
 0x620   :  { %v1258_v52 = vsel %vm331_vm3, %v4523_v48, 0.0 }
 0x622   :  { %1263 = vrot.lane.b32.xlu1 %v4947_v19, %s4751_s29 }
 0x623   :  { %v4525_v50 = vpop.eup %4524 }
 0x624   :  { %v1424_v54 = vsel %vm331_vm3, %v4525_v50, 0.0 }
 0x627   :  { %v5051_v53 = vpop.eup %4526 }
 0x628   :  { %v1590_v55 = vsel %vm331_vm3, %v5051_v53, 0.0 }
 0x62b   :  { %1097 = vrot.lane.b32.xlu0 %v4947_v19, %s4741_s17 }
 0x646   :  { %912 = vadd.xlane.f32.xlu1 %v911_v47 }
 0x64a   :  { %1093 = vadd.xlane.f32.xlu0 %v1092_v51  ;;  %1259 = vadd.xlane.f32.xlu1 %v1258_v52 }
 0x64e   :  { %1425 = vadd.xlane.f32.xlu0 %v1424_v54  ;;  %1591 = vadd.xlane.f32.xlu1 %v1590_v55 }
 0x65f   :  { %1595 = vrot.lane.b32.xlu1 %v4947_v19, %s4750_s14 }
 0x664   :  { %1429 = vrot.lane.b32.xlu0 %v4947_v19, %s4749_s0 }
 0x69e   :  { %v581_v58 = vpop.xlane.xlu1 %580 }
 0x69f   :  { %4528 = vrcp.f32 %v581_v58 }
 0x6a2   :  { %v747_v59 = vpop.xlane.xlu0 %746  ;;  %v1264_v19 = vpop.permute.xlu1 %1263 }
 0x6a3   :  { %4530 = vrcp.f32 %v747_v59 }
 0x6a6   :  { %v1098_v0 = vpop.permute.xlu0 %1097 }
 0x6a9   :  { %v4529_v60 = vpop.eup %4528 }
 0x6aa   :  { %v583_v61 = vmul.f32 %v4529_v60, %v4515_v26 }
 0x6ac   :  { %4167 = vmatmul.mubr.msk.f32.vlgmr.msra.gmra.mrb[6].mxu0 %vm331_vm3, %v583_v61 }
 0x6ad   :  { %v4531_v62 = vpop.eup %4530  ;;  %4175 = vmatpush3.msra.mxu0 %v751_v56  ;;  %4176 = vmatprep.mubr.msk.f32.mxu0 %vm4740_vm2, %v4739_v16 }
 0x6ae   :  { %v749_v63 = vmul.f32 %v4531_v62, %v4517_v29  ;;  %4184 = vmatprep.subr.mxu0 %v4739_v16  ;;  %v4414_v29 = vpack.c.bf16 %v218_v28, %v217_v27 }
 0x6b0   :  { %4177 = vmatmul.mubr.msk.f32.vlgmr.msra.gmra.mrb[8].mxu0 %vm331_vm3, %v749_v63  ;;  %4415 = vmatprep.subr.bf16.mxu1 %v4414_v29 }
 0x6b1   :  { %4185 = vmatpush3.msra.mxu0 %v917_v57  ;;  %4186 = vmatprep.mubr.msk.f32.mxu0 %vm4740_vm2, %v4739_v16 }
 0x6b2   :  { %4194 = vmatprep.subr.mxu0 %v4739_v16  ;;  %4417 = vmatpush3.bf16.msra.mxu1 %v4414_v29 }
 0x6b3   :  { %4419 = vmatprep.subr.bf16.mxu1 %v4418_v33 }
 0x6b6   :  { %4421 = vmatpush3.bf16.msra.mxu1 %v4418_v33 }
 0x6d3   :  { %v913_v1 = vpop.xlane.xlu1 %912 }
 0x6d4   :  { %4532 = vrcp.f32 %v913_v1 }
 0x6d7   :  { %v1094_v2 = vpop.xlane.xlu0 %1093  ;;  %v1260_v3 = vpop.xlane.xlu1 %1259 }
 0x6d8   :  { %4534 = vrcp.f32 %v1094_v2 }
 0x6d9   :  { %4536 = vrcp.f32 %v1260_v3 }
 0x6db   :  { %v1426_v4 = vpop.xlane.xlu0 %1425  ;;  %v1592_v7 = vpop.xlane.xlu1 %1591 }
 0x6dc   :  { %4538 = vrcp.f32 %v1426_v4 }
 0x6dd   :  { %4540 = vrcp.f32 %v1592_v7  ;;  %v225_v7 = vld [vmem:[%s5457_s9 + $0x8] sm:$0xff] }
 0x6de   :  { %v4533_v5 = vpop.eup %4532 }
 0x6df   :  { %v915_v6 = vmul.f32 %v4533_v5, %v4519_v45  ;;  %v1430_v13 = vpop.permute.xlu0 %1429  ;;  %v1596_v20 = vpop.permute.xlu1 %1595 }
 0x6e1   :  { %4187 = vmatmul.mubr.msk.f32.vlgmr.msra.gmra.mrb[10].mxu0 %vm331_vm3, %v915_v6 }
 0x6e2   :  { %4195 = vmatpush3.msra.mxu0 %v1098_v0  ;;  %4196 = vmatprep.mubr.msk.f32.mxu0 %vm4740_vm2, %v4739_v16  ;;  %v4535_v8 = vpop.eup %4534 }
 0x6e3   :  { %4204 = vmatprep.subr.mxu0 %v4739_v16  ;;  %v1096_v9 = vmul.f32 %v4535_v8, %v4521_v46  ;;  %v4537_v10 = vpop.eup %4536 }
 0x6e4   :  { %v1262_v11 = vmul.f32 %v4537_v10, %v4523_v48  ;;  %v227_v10 = vld [vmem:[%s5457_s9 + $0x18] sm:$0xff] }
 0x6e5   :  { %4197 = vmatmul.mubr.msk.f32.vlgmr.msra.gmra.mrb[12].mxu0 %vm331_vm3, %v1096_v9  ;;  %v226_v9 = vld [vmem:[%s5457_s9 + $0x10] sm:$0xff] }
 0x6e6   :  { %4205 = vmatpush3.msra.mxu0 %v1264_v19  ;;  %4206 = vmatprep.mubr.msk.f32.mxu0 %vm4740_vm2, %v4739_v16  ;;  %v4539_v12 = vpop.eup %4538 }
 0x6e7   :  { %4214 = vmatprep.subr.mxu0 %v4739_v16  ;;  %v1428_v17 = vmul.f32 %v4539_v12, %v4525_v50  ;;  %v4541_v18 = vpop.eup %4540  ;;  %v229_v12 = vld [vmem:[%s5459_s11] sm:$0xff] }
 0x6e8   :  { %v1594_v22 = vmul.f32 %v4541_v18, %v5051_v53 }
 0x6e9   :  { %4207 = vmatmul.mubr.msk.f32.vlgmr.msra.gmra.mrb[14].mxu0 %vm331_vm3, %v1262_v11  ;;  %v4426_v11 = vpack.c.bf16 %v227_v10, %v226_v9 }
 0x6ea   :  { %4215 = vmatpush3.msra.mxu0 %v1430_v13  ;;  %4216 = vmatprep.mubr.msk.f32.mxu0 %vm4740_vm2, %v4739_v16  ;;  %v230_v13 = vld [vmem:[%s5459_s11 + $0x8] sm:$0xff] }
 0x6eb   :  { %4224 = vmatprep.subr.mxu0 %v4739_v16  ;;  %v4430_v18 = vpack.c.bf16 %v230_v13, %v229_v12 }
 0x6ed   :  { %4217 = vmatmul.mubr.msk.f32.vlgmr.msra.gmra.mrb[16].mxu0 %vm331_vm3, %v1428_v17  ;;  %v231_v17 = vld [vmem:[%s5459_s11 + $0x10] sm:$0xff]  ;;  %4431 = vmatprep.subr.bf16.mxu1 %v4430_v18 }
 0x6ee   :  { %4225 = vmatpush3.msra.mxu0 %v1596_v20  ;;  %4226 = vmatprep.mubr.msk.f32.mxu0 %vm4740_vm2, %v4739_v16  ;;  %v232_v20 = vld [vmem:[%s5459_s11 + $0x18] sm:$0xff] }
 0x6f1   :  { %4227 = vmatmul.mubr.msk.f32.vlgmr.msra.gmra.mrb[18].mxu0 %vm331_vm3, %v1594_v22  ;;  %v4434_v22 = vpack.c.bf16 %v232_v20, %v231_v17  ;;  %v3941_v20 = vld [vmem:[%s5461_s13] ss:$0 sm:$0xff] }
 0x77f   :  { %v656_v23 = vpop.f32.mrb[6].mxu0 }
 0x780   :  { %993 = vrot.lane.b32.xlu0 %v656_v23, %s4736_s18  ;;  %v4168_v24 = vpop.f32.mrb[7].mxu0  ;;  %v233_v23 = vld [vmem:[%s5459_s11 + $0x20] sm:$0xff] }
 0x781   :  { %v234_v24 = vld [vmem:[%s5459_s11 + $0x28] sm:$0xff] }
 0x783   :  { %v822_v25 = vpop.f32.mrb[8].mxu0 }
 0x784   :  { %997 = vrot.lane.b32.xlu1 %v822_v25, %s4731_s28  ;;  %v4178_v26 = vpop.f32.mrb[9].mxu0  ;;  %v4438_v25 = vpack.c.bf16 %v234_v24, %v233_v23 }
 0x7b4   :  { %v988_v30 = vpop.f32.mrb[10].mxu0 }
 0x7b5   :  { %1001 = vrot.lane.b32.xlu1 %v988_v30, %s5465_s2  ;;  %v4188_v21 = vpop.f32.mrb[11].mxu0 }
 0x7b6   :  { %v3933_v21 = vld [vmem:[%s5455_s7] ss:$0 sm:$0xff] }
 0x7b8   :  { %v1169_v34 = vpop.f32.mrb[12].mxu0 }
 0x7b9   :  { %v4198_v35 = vpop.f32.mrb[13].mxu0 }
 0x7bc   :  { %v1335_v36 = vpop.f32.mrb[14].mxu0 }
 0x7bd   :  { %1672 = vrot.lane.b32.xlu0 %v1335_v36, %s4736_s18  ;;  %v4208_v37 = vpop.f32.mrb[15].mxu0 }
 0x7c0   :  { %v1501_v38 = vpop.f32.mrb[16].mxu0 }
 0x7c1   :  { %1676 = vrot.lane.b32.xlu0 %v1501_v38, %s4731_s28  ;;  %v4218_v39 = vpop.f32.mrb[17].mxu0 }
 0x7c4   :  { %v1667_v40 = vpop.f32.mrb[18].mxu0 }
 0x7c5   :  { %1680 = vrot.lane.b32.xlu1 %v1667_v40, %s5465_s2  ;;  %v4228_v41 = vpop.f32.mrb[19].mxu0 }
 0x7c6   :  { %v235_v41 = vld [vmem:[%s5459_s11 + $0x30] sm:$0xff] }
 0x7f2   :  { %v994_v42 = vpop.permute.xlu0 %993 }
 0x7f3   :  { %v1004_v44 = vsel %vm331_vm3, %v5026_v49, %v994_v42  ;;  %v3930_v49 = vld [vmem:[%s5454_s6] ss:$0 sm:$0xff]  ;;  %v236_v42 = vld [vmem:[%s5459_s11 + $0x38] sm:$0xff] }
 0x7f6   :  { %v998_v43 = vpop.permute.xlu1 %997 }
 0x7f7   :  { %v1005_v45 = vsel %vm130_vm0, %v1004_v44, %v998_v43  ;;  %v4442_v43 = vpack.c.bf16 %v236_v42, %v235_v41  ;;  %v3935_v44 = vld [vmem:[#allocation7] ss:$0 sm:$0xff] }
 0x827   :  { %v1002_v46 = vpop.permute.xlu1 %1001 }
 0x828   :  { %v1007_v47 = vsel %vm1006_vm4, %v1005_v45, %v1002_v46 }
 0x829   :  { %4237 = vmatprep.mubr.msk.f32.mxu1 %vm246_vm1, %v1007_v47 }
 0x82f   :  { %v1673_v48 = vpop.permute.xlu0 %1672 }
 0x830   :  { %v1683_v51 = vsel %vm331_vm3, %v1169_v34, %v1673_v48  ;;  %v3934_v34 = vld [vmem:[#allocation5] ss:$0 sm:$0xff] }
 0x833   :  { %v1677_v50 = vpop.permute.xlu0 %1676 }
 0x834   :  { %v1684_v52 = vsel %vm130_vm0, %v1683_v51, %v1677_v50 }
 0x837   :  { %v1681_v53 = vpop.permute.xlu1 %1680 }
 0x838   :  { %v1685_v54 = vsel %vm1006_vm4, %v1684_v52, %v1681_v53  ;;  %v3938_v52 = vld [vmem:[#allocation8] ss:$0 sm:$0xff] }
 0x839   :  { %4238 = vmatmul.mubr.msk.f32.vlgmr.msra.gmra.mrb[16].mxu1 %vm246_vm1, %v1685_v54 }
 0x83a   :  { %4433 = vmatpush3.bf16.msra.mxu1 %v4430_v18 }
 0x83b   :  { %4435 = vmatprep.subr.bf16.mxu1 %v4434_v22 }
 0x83e   :  { %4437 = vmatpush3.bf16.msra.mxu1 %v4434_v22 }
 0x83f   :  { %4439 = vmatprep.subr.bf16.mxu1 %v4438_v25 }
 0x842   :  { %4441 = vmatpush3.bf16.msra.mxu1 %v4438_v25  ;;  %v3942_v25 = vld [vmem:[#allocation10] ss:$0 sm:$0xff] }
 0x843   :  { %4443 = vmatprep.subr.bf16.mxu1 %v4442_v43 }
 0x846   :  { %4445 = vmatpush3.bf16.msra.mxu1 %v4442_v43 }
 0x847   :  { %4291 = vmatprep.subr.mxu1 %v4739_v16 }
 0x90c   :  { %v4239_v55 = vpop.f32.mrb[16].mxu1 }
 0x90d   :  { %v1770_v56 = vadd.f32 %v4239_v55, %v3930_v49  ;;  %v1764_v57 = vpop.f32.mrb[17].mxu1 }
 0x90e   :  { %v1765_v58 = vadd.f32 %v3930_v49, %v1764_v57 }
 0x90f   :  { %v1774_v59 = vadd.f32 %v1770_v56, %v4932_v15 }
 0x910   :  { %v1773_v60 = vadd.f32 %v1765_v58, %v4930_v14  ;;  %v224_v14 = vld [vmem:[%s5457_s9] sm:$0xff] }
 0x911   :  { %v1778_v61 = vsel %vm246_vm1, %v1774_v59, 0.0  ;;  %v4422_v8 = vpack.c.bf16 %v225_v7, %v224_v14  ;;  %v3945_v14 = vld [vmem:[%s5451_s3 + $0x30] sm:$0xff]  ;;  %v3946_v7 = vld [vmem:[%s5451_s3 + $0x38] sm:$0xff] }
 0x912   :  { %1779 = vadd.xlane.f32.xlu1 %v1778_v61  ;;  %v1775_v62 = vsel %vm246_vm1, %v1773_v60, 0.0 }
 0x913   :  { %1776 = vadd.xlane.f32.xlu0 %v1775_v62  ;;  %4423 = vmatprep.subr.bf16.mxu0 %v4422_v8 }
 0x914   :  { %4425 = vmatpush3.bf16.msra.mxu0 %v4422_v8  ;;  %v4450_v8 = vpack.c.bf16 %v3946_v7, %v3945_v14 }
 0x915   :  { %4427 = vmatprep.subr.bf16.mxu0 %v4426_v11 }
 0x918   :  { %4429 = vmatpush3.bf16.msra.mxu0 %v4426_v11 }
 0x99f   :  { %v1780_v63 = vpop.xlane.xlu1 %1779 }
 0x9a0   :  { %v1783_v19 = vmul.f32 0.03125, %v1780_v63  ;;  %v1777_v0 = vpop.xlane.xlu0 %1776 }
 0x9a1   :  { %v1782_v1 = vmul.f32 0.03125, %v1777_v0 }
 0x9a2   :  { %v1785_v2 = vsub.f32 %v1774_v59, %v1783_v19 }
 0x9a3   :  { %v1784_v3 = vsub.f32 %v1773_v60, %v1782_v1 }
 0x9a4   :  { %v1787_v6 = vmul.f32 %v1785_v2, %v1785_v2 }
 0x9a5   :  { %v1786_v4 = vmul.f32 %v1784_v3, %v1784_v3 }
 0x9a6   :  { %v1791_v15 = vsel %vm246_vm1, %v1787_v6, 0.0  ;;  %v3944_v6 = vld [vmem:[%s5451_s3 + $0x28] sm:$0xff] }
 0x9a7   :  { %v1788_v5 = vsel %vm246_vm1, %v1786_v4, 0.0 }
 0x9a8   :  { %1789 = vadd.xlane.f32.xlu0 %v1788_v5  ;;  %v3943_v5 = vld [vmem:[%s5451_s3 + $0x20] sm:$0xff] }
 0x9ac   :  { %1792 = vadd.xlane.f32.xlu0 %v1791_v15  ;;  %v4446_v15 = vpack.c.bf16 %v3944_v6, %v3943_v5 }
 0x9ae   :  { %4447 = vmatprep.subr.bf16.mxu0 %v4446_v15 }
 0xa35   :  { %v1790_v26 = vpop.xlane.xlu0 %1789 }
 0xa36   :  { %v1794_v27 = vmul.f32 0.03125, %v1790_v26 }
 0xa38   :  { %v1796_v28 = vadd.f32 1e-05, %v1794_v27 }
 0xa39   :  { %v1793_v29 = vpop.xlane.xlu0 %1792 }
 0xa3a   :  { %4542 = vrsqrt.f32 %v1796_v28  ;;  %v1795_v30 = vmul.f32 0.03125, %v1793_v29 }
 0xa3c   :  { %v1797_v31 = vadd.f32 1e-05, %v1795_v30  ;;  %v3967_v30 = vld [vmem:[%s5452_s4 + $0x1] ss:$0 sm:$0xff]  ;;  %s5468_s4 = smov 24  }
 0xa3e   :  { %4544 = vrsqrt.f32 %v1797_v31 }
 0xa44   :  { %v4543_v32 = vpop.eup %4542 }
 0xa45   :  { %v1800_v33 = vmul.f32 %v4543_v32, %v1784_v3 }
 0xa47   :  { %v1808_v35 = vmul.f32 %v3933_v21, %v1800_v33 }
 0xa48   :  { %v4545_v36 = vpop.eup %4544 }
 0xa49   :  { %v1801_v37 = vmul.f32 %v4545_v36, %v1785_v2  ;;  %v1816_v38 = vadd.f32 %v3934_v34, %v1808_v35 }
 0xa4b   :  { %v1809_v39 = vmul.f32 %v3933_v21, %v1801_v37  ;;  %4248 = vmatprep.mubr.msk.f32.mxu0 %vm246_vm1, %v1816_v38 }
 0xa4d   :  { %v1817_v40 = vadd.f32 %v3934_v34, %v1809_v39 }
 0xa4f   :  { %4249 = vmatmul.mubr.msk.f32.vlgmr.msra.gmra.mrb[20].mxu0 %vm246_vm1, %v1817_v40 }
 0xa50   :  { %4449 = vmatpush3.bf16.msra.mxu0 %v4446_v15 }
 0xa51   :  { %4451 = vmatprep.subr.bf16.mxu0 %v4450_v8 }
 0xa54   :  { %4453 = vmatpush3.bf16.msra.mxu0 %v4450_v8 }
 0xa55   :  { %4281 = vmatprep.subr.mxu0 %v4739_v16 }
 0xb22   :  { %v4250_v45 = vpop.f32.mrb[20].mxu0 }
 0xb23   :  { %v1902_v46 = vadd.f32 %v4250_v45, %v3935_v44  ;;  %v1896_v47 = vpop.f32.mrb[21].mxu0 }
 0xb24   :  { %v1897_v48 = vadd.f32 %v3935_v44, %v1896_v47 }
 0xb25   :  { %v1906_v51 = vmax.f32 %v1902_v46, 0.0 }
 0xb26   :  { %v1905_v50 = vmax.f32 %v1897_v48, 0.0 }
 0xb28   :  { %4267 = vmatprep.mubr.msk.f32.mxu1 %vm1913_vm5, %v1905_v50 }
 0xb29   :  { %4268 = vmatmul.mubr.msk.f32.vlgmr.msra.gmra.mrb[18].mxu1 %vm1913_vm5, %v1906_v51 }
 0xb2a   :  { %4293 = vmatprep.mubr.msk.f32.mxu1 %vm4740_vm2, %v4739_v16 }
 0xbfc   :  { %v4269_v53 = vpop.f32.mrb[18].mxu1 }
 0xbfd   :  { %v1992_v54 = vadd.f32 %v4269_v53, %v3938_v52  ;;  %v1986_v49 = vpop.f32.mrb[19].mxu1 }
 0xbfe   :  { %v1987_v55 = vadd.f32 %v3938_v52, %v1986_v49 }
 0xbff   :  { %v1996_v56 = vadd.f32 %v1992_v54, %v1817_v40 }
 0xc00   :  { %v1995_v57 = vadd.f32 %v1987_v55, %v1816_v38 }
 0xc01   :  { %v2000_v58 = vsel %vm246_vm1, %v1996_v56, 0.0 }
 0xc02   :  { %2001 = vadd.xlane.f32.xlu0 %v2000_v58  ;;  %v1997_v59 = vsel %vm246_vm1, %v1995_v57, 0.0 }
 0xc03   :  { %1998 = vadd.xlane.f32.xlu1 %v1997_v59 }
 0xc8f   :  { %v2002_v60 = vpop.xlane.xlu0 %2001 }
 0xc90   :  { %v2004_v61 = vmul.f32 0.03125, %v2002_v60  ;;  %v1999_v62 = vpop.xlane.xlu1 %1998 }
 0xc91   :  { %v2003_v63 = vmul.f32 0.03125, %v1999_v62 }
 0xc92   :  { %v2006_v19 = vsub.f32 %v1996_v56, %v2004_v61 }
 0xc93   :  { %v2005_v0 = vsub.f32 %v1995_v57, %v2003_v63 }
 0xc94   :  { %v2008_v1 = vmul.f32 %v2006_v19, %v2006_v19 }
 0xc95   :  { %v2007_v2 = vmul.f32 %v2005_v0, %v2005_v0 }
 0xc96   :  { %v2012_v3 = vsel %vm246_vm1, %v2008_v1, 0.0 }
 0xc97   :  { %2013 = vadd.xlane.f32.xlu0 %v2012_v3  ;;  %v2009_v4 = vsel %vm246_vm1, %v2007_v2, 0.0 }
 0xc98   :  { %2010 = vadd.xlane.f32.xlu1 %v2009_v4 }
 0xd24   :  { %v2014_v9 = vpop.xlane.xlu0 %2013 }
 0xd25   :  { %v2016_v10 = vmul.f32 0.03125, %v2014_v9  ;;  %v2011_v11 = vpop.xlane.xlu1 %2010 }
 0xd26   :  { %v2015_v12 = vmul.f32 0.03125, %v2011_v11 }
 0xd27   :  { %v2018_v13 = vadd.f32 1e-05, %v2016_v10 }
 0xd28   :  { %v2017_v17 = vadd.f32 1e-05, %v2015_v12 }
 0xd29   :  { %4546 = vrsqrt.f32 %v2018_v13 }
 0xd2a   :  { %4548 = vrsqrt.f32 %v2017_v17 }
 0xd33   :  { %v4547_v18 = vpop.eup %4546 }
 0xd34   :  { %v4549_v22 = vpop.eup %4548  ;;  %v2022_v23 = vmul.f32 %v4547_v18, %v2006_v19 }
 0xd35   :  { %v2021_v24 = vmul.f32 %v4549_v22, %v2005_v0 }
 0xd36   :  { %v2030_v26 = vmul.f32 %v3941_v20, %v2022_v23 }
 0xd37   :  { %v2029_v27 = vmul.f32 %v3941_v20, %v2021_v24 }
 0xd38   :  { %v5189_v29 = vadd.f32 %v3942_v25, %v2030_v26 }
 0xd39   :  { %v5187_v28 = vadd.f32 %v3942_v25, %v2029_v27 }
 0xd3b   :  { %4278 = vmatprep.mubr.msk.f32.mxu0 %vm246_vm1, %v5187_v28 }
 0xd3c   :  { %4279 = vmatmul.mubr.msk.f32.vlgmr.msra.gmra.mrb[22].mxu0 %vm246_vm1, %v5189_v29 }
 0xd3d   :  { %4283 = vmatprep.mubr.msk.f32.mxu0 %vm4740_vm2, %v4739_v16 }
 0xe0f   :  { %v4280_v31 = vpop.f32.mrb[22].mxu0 }
 0xe10   :  { %v2157_v32 = vpop.f32.mrb[23].mxu0  ;;  %v5214_v33 = vadd.f32 %v4280_v31, %v3967_v30 }
 0xe11   :  { %v5200_v21 = vadd.f32 %v3967_v30, %v2157_v32 }
 0xe13   :  { %2333 = vrot.lane.b32.xlu0 %v5200_v21, %s4743_s22  ;;  %2167 = vrot.lane.b32.xlu1 %v5200_v21, %s4742_s20 }
 0xe17   :  { %2497 = vrot.lane.b32.xlu0 %v5200_v21, %s4746_s23  ;;  %2331 = vrot.lane.b32.xlu1 %v5200_v21, %s4744_s10 }
 0xe1b   :  { %2663 = vrot.lane.b32.xlu0 %v5200_v21, %s4747_s24  ;;  %2499 = vrot.lane.b32.xlu1 %v5200_v21, %s4745_s19 }
 0xe1f   :  { %3011 = vrot.lane.b32.xlu0 %v5214_v33, %s4743_s22  ;;  %2665 = vrot.lane.b32.xlu1 %v5200_v21, %s4748_s25 }
 0xe23   :  { %3177 = vrot.lane.b32.xlu0 %v5214_v33, %s4745_s19  ;;  %2845 = vrot.lane.b32.xlu1 %v5214_v33, %s4742_s20 }
 0xe27   :  { %3343 = vrot.lane.b32.xlu0 %v5214_v33, %s4748_s25  ;;  %3009 = vrot.lane.b32.xlu1 %v5214_v33, %s4744_s10 }
 0xe2b   :  { %2255 = vrot.lane.b32.xlu0 %v5200_v21, %s4741_s17  ;;  %3175 = vrot.lane.b32.xlu1 %v5214_v33, %s4746_s23 }
 0xe2f   :  { %3341 = vrot.lane.b32.xlu1 %v5214_v33, %s4747_s24 }
 0xe33   :  { %2421 = vrot.lane.b32.xlu1 %v5200_v21, %s4751_s29 }
 0xe85   :  { %v2334_v34 = vpop.permute.xlu0 %2333  ;;  %v2168_v35 = vpop.permute.xlu1 %2167 }
 0xe86   :  { %4282 = vmatpush3.xpose.msk.msra.mxu0 %vm331_vm3, %v2168_v35  ;;  %4292 = vmatpush3.xpose.msk.msra.mxu1 %vm331_vm3, %v2334_v34 }
 0xe87   :  { %4301 = vmatprep.subr.mxu1 %v4739_v16  ;;  %4286 = vmatprep.subr.mxu0 %v4739_v16 }
 0xe89   :  { %v2498_v36 = vpop.permute.xlu0 %2497  ;;  %4284 = vmatmul.mubr.msk.f32.vlgmr.msra.gmra.mrb[24].mxu0 %vm331_vm3, %v5200_v21  ;;  %v2332_v37 = vpop.permute.xlu1 %2331 }
 0xe8a   :  { %4294 = vmatmul.mubr.msk.f32.vlgmr.msra.gmra.mrb[20].mxu1 %vm331_vm3, %v2332_v37  ;;  %4288 = vmatprep.mubr.msk.f32.mxu0 %vm4740_vm2, %v4739_v16 }
 0xe8b   :  { %4303 = vmatprep.mubr.msk.f32.mxu1 %vm4740_vm2, %v4739_v16 }
 0xe8d   :  { %v2664_v38 = vpop.permute.xlu0 %2663  ;;  %v2500_v39 = vpop.permute.xlu1 %2499 }
 0xe8e   :  { %4302 = vmatpush3.xpose.msk.msra.mxu1 %vm331_vm3, %v2500_v39 }
 0xe8f   :  { %4311 = vmatprep.subr.mxu1 %v4739_v16 }
 0xe91   :  { %v3012_v40 = vpop.permute.xlu0 %3011  ;;  %4304 = vmatmul.mubr.msk.f32.vlgmr.msra.gmra.mrb[22].mxu1 %vm331_vm3, %v2498_v36  ;;  %v2666_v41 = vpop.permute.xlu1 %2665 }
 0xe92   :  { %4312 = vmatpush3.xpose.msk.msra.mxu1 %vm331_vm3, %v2666_v41  ;;  %4313 = vmatprep.mubr.msk.f32.mxu1 %vm4740_vm2, %v4739_v16 }
 0xe93   :  { %4321 = vmatprep.subr.mxu1 %v4739_v16 }
 0xe95   :  { %v3178_v42 = vpop.permute.xlu0 %3177  ;;  %4314 = vmatmul.mubr.msk.f32.vlgmr.msra.gmra.mrb[24].mxu1 %vm331_vm3, %v2664_v38  ;;  %v2846_v43 = vpop.permute.xlu1 %2845 }
 0xe96   :  { %4322 = vmatpush3.xpose.msk.msra.mxu1 %vm331_vm3, %v2846_v43  ;;  %4323 = vmatprep.mubr.msk.f32.mxu1 %vm4740_vm2, %v4739_v16 }
 0xe97   :  { %4331 = vmatprep.subr.mxu1 %v4739_v16 }
 0xe99   :  { %v3344_v44 = vpop.permute.xlu0 %3343  ;;  %4324 = vmatmul.mubr.msk.f32.vlgmr.msra.gmra.mrb[26].mxu1 %vm331_vm3, %v5214_v33  ;;  %v3010_v45 = vpop.permute.xlu1 %3009 }
 0xe9a   :  { %4332 = vmatpush3.xpose.msk.msra.mxu1 %vm331_vm3, %v3012_v40  ;;  %4333 = vmatprep.mubr.msk.f32.mxu1 %vm4740_vm2, %v4739_v16 }
 0xe9b   :  { %4341 = vmatprep.subr.mxu1 %v4739_v16 }
 0xe9d   :  { %v2256_v46 = vpop.permute.xlu0 %2255  ;;  %4334 = vmatmul.mubr.msk.f32.vlgmr.msra.gmra.mrb[28].mxu1 %vm331_vm3, %v3010_v45  ;;  %v3176_v47 = vpop.permute.xlu1 %3175 }
 0xe9e   :  { %4287 = vmatpush3.msra.mxu0 %v2256_v46  ;;  %4342 = vmatpush3.xpose.msk.msra.mxu1 %vm331_vm3, %v3178_v42 }
 0xe9f   :  { %4343 = vmatprep.mubr.msk.f32.mxu1 %vm4740_vm2, %v4739_v16  ;;  %4351 = vmatprep.subr.mxu1 %v4739_v16 }
 0xea0   :  { %4296 = vmatprep.subr.mxu0 %v4739_v16 }
 0xea1   :  { %4344 = vmatmul.mubr.msk.f32.vlgmr.msra.gmra.mrb[30].mxu1 %vm331_vm3, %v3176_v47  ;;  %v3342_v48 = vpop.permute.xlu1 %3341 }
 0xea2   :  { %4352 = vmatpush3.xpose.msk.msra.mxu1 %vm331_vm3, %v3344_v44  ;;  %4353 = vmatprep.mubr.msk.f32.mxu1 %vm4740_vm2, %v4739_v16 }
 0xea5   :  { %4354 = vmatmul.mubr.msk.f32.vlgmr.msra.gmra.mrb[32].mxu1 %vm331_vm3, %v3342_v48  ;;  %v5288_v17 = vpop.permute.xlu1 %2421 }
 0xf5c   :  { %v2239_v50 = vpop.f32.mrb[24].mxu0 }
 0xf5d   :  { %v2243_v51 = vmul.f32 0.35355338, %v2239_v50  ;;  %v4285_v52 = vpop.f32.mrb[25].mxu0  ;;  %v2405_v53 = vpop.f32.mrb[20].mxu1 }
 0xf5e   :  { %v2409_v54 = vmul.f32 0.35355338, %v2405_v53  ;;  %v4295_v49 = vpop.f32.mrb[21].mxu1 }
 0xf5f   :  { %v2244_v55 = vsel %vm331_vm3, %v2243_v51, -inf }
 0xf60   :  { %2245 = vmax.xlane.f32.xlu0 %v2244_v55  ;;  %v2410_v56 = vsel %vm331_vm3, %v2409_v54, -inf }
 0xf61   :  { %2411 = vmax.xlane.f32.xlu1 %v2410_v56 }
 0xf64   :  { %v2571_v57 = vpop.f32.mrb[22].mxu1 }
 0xf65   :  { %v2575_v58 = vmul.f32 0.35355338, %v2571_v57  ;;  %v4305_v59 = vpop.f32.mrb[23].mxu1 }
 0xf67   :  { %v2576_v60 = vsel %vm331_vm3, %v2575_v58, -inf }
 0xf68   :  { %2577 = vmax.xlane.f32.xlu0 %v2576_v60  ;;  %v2737_v61 = vpop.f32.mrb[24].mxu1 }
 0xf69   :  { %v2741_v62 = vmul.f32 0.35355338, %v2737_v61  ;;  %v4315_v63 = vpop.f32.mrb[25].mxu1 }
 0xf6b   :  { %v2742_v19 = vsel %vm331_vm3, %v2741_v62, -inf }
 0xf6c   :  { %2743 = vmax.xlane.f32.xlu0 %v2742_v19  ;;  %v2917_v0 = vpop.f32.mrb[26].mxu1 }
 0xf6d   :  { %v2921_v1 = vmul.f32 0.35355338, %v2917_v0  ;;  %v4325_v2 = vpop.f32.mrb[27].mxu1 }
 0xf6f   :  { %v2922_v3 = vsel %vm331_vm3, %v2921_v1, -inf }
 0xf70   :  { %2923 = vmax.xlane.f32.xlu1 %v2922_v3  ;;  %v3083_v4 = vpop.f32.mrb[28].mxu1 }
 0xf71   :  { %v3087_v5 = vmul.f32 0.35355338, %v3083_v4  ;;  %v4335_v6 = vpop.f32.mrb[29].mxu1 }
 0xf73   :  { %v3088_v15 = vsel %vm331_vm3, %v3087_v5, -inf }
 0xf74   :  { %3089 = vmax.xlane.f32.xlu0 %v3088_v15  ;;  %v3249_v14 = vpop.f32.mrb[30].mxu1 }
 0xf75   :  { %v3253_v7 = vmul.f32 0.35355338, %v3249_v14  ;;  %v4345_v8 = vpop.f32.mrb[31].mxu1 }
 0xf77   :  { %v3254_v9 = vsel %vm331_vm3, %v3253_v7, -inf }
 0xf78   :  { %3255 = vmax.xlane.f32.xlu1 %v3254_v9  ;;  %v3415_v10 = vpop.f32.mrb[32].mxu1 }
 0xf79   :  { %v3419_v11 = vmul.f32 0.35355338, %v3415_v10  ;;  %v4355_v12 = vpop.f32.mrb[33].mxu1 }
 0xf7b   :  { %v3420_v13 = vsel %vm331_vm3, %v3419_v11, -inf }
 0xf7c   :  { %3421 = vmax.xlane.f32.xlu0 %v3420_v13 }
 0xf89   :  { %2753 = vrot.lane.b32.xlu1 %v5200_v21, %s4750_s14 }
 0xf92   :  { %2587 = vrot.lane.b32.xlu0 %v5200_v21, %s4749_s0 }
 0xfed   :  { %v2246_v18 = vpop.xlane.xlu0 %2245 }
 0xfee   :  { %v2247_v20 = vsub.f32 %v2243_v51, %v2246_v18  ;;  %v2412_v22 = vpop.xlane.xlu1 %2411 }
 0xfef   :  { %v2413_v23 = vsub.f32 %v2409_v54, %v2412_v22 }
 0xff0   :  { %v2248_v24 = vmul.f32 1.442695, %v2247_v20 }
 0xff1   :  { %v2414_v25 = vmul.f32 1.442695, %v2413_v23 }
 0xff2   :  { %4550 = vpow2.f32 %v2248_v24 }
 0xff3   :  { %4552 = vpow2.f32 %v2414_v25 }
 0xff5   :  { %v2578_v26 = vpop.xlane.xlu0 %2577 }
 0xff6   :  { %v2579_v27 = vsub.f32 %v2575_v58, %v2578_v26 }
 0xff8   :  { %v2580_v30 = vmul.f32 1.442695, %v2579_v27 }
 0xff9   :  { %v2744_v31 = vpop.xlane.xlu0 %2743 }
 0xffa   :  { %4554 = vpow2.f32 %v2580_v30  ;;  %v2745_v32 = vsub.f32 %v2741_v62, %v2744_v31 }
 0xffc   :  { %v4551_v34 = vpop.eup %4550  ;;  %v2746_v35 = vmul.f32 1.442695, %v2745_v32 }
 0xffd   :  { %v4553_v36 = vpop.eup %4552  ;;  %v2250_v21 = vsel %vm331_vm3, %v4551_v34, 0.0  ;;  %v2924_v42 = vpop.xlane.xlu1 %2923 }
 0xffe   :  { %4556 = vpow2.f32 %v2746_v35  ;;  %2251 = vadd.xlane.f32.xlu1 %v2250_v21  ;;  %v2416_v37 = vsel %vm331_vm3, %v4553_v36, 0.0  ;;  %v2925_v43 = vsub.f32 %v2921_v1, %v2924_v42  ;;  %v3951_v42 = vld [vmem:[%s5453_s5 + $0x38] sm:$0xff] }
 0xfff   :  { %2417 = vadd.xlane.f32.xlu0 %v2416_v37 }
0x1000   :  { %v2926_v47 = vmul.f32 1.442695, %v2925_v43 }
0x1001   :  { %v3090_v44 = vpop.xlane.xlu0 %3089 }
0x1002   :  { %v3091_v46 = vsub.f32 %v3087_v5, %v3090_v44  ;;  %4558 = vpow2.f32 %v2926_v47 }
0x1004   :  { %v4555_v38 = vpop.eup %4554  ;;  %v3092_v51 = vmul.f32 1.442695, %v3091_v46 }
0x1005   :  { %v2582_v39 = vsel %vm331_vm3, %v4555_v38, 0.0  ;;  %v3256_v45 = vpop.xlane.xlu1 %3255 }
0x1006   :  { %2583 = vadd.xlane.f32.xlu1 %v2582_v39  ;;  %v3257_v48 = vsub.f32 %v3253_v7, %v3256_v45  ;;  %4560 = vpow2.f32 %v3092_v51  ;;  %v3949_v39 = vld [vmem:[%s5453_s5 + $0x28] sm:$0xff] }
0x1008   :  { %v5293_v40 = vpop.eup %4556  ;;  %v3258_v52 = vmul.f32 1.442695, %v3257_v48 }
0x1009   :  { %v2748_v41 = vsel %vm331_vm3, %v5293_v40, 0.0  ;;  %v3422_v50 = vpop.xlane.xlu0 %3421  ;;  %v2754_v62 = vpop.permute.xlu1 %2753 }
0x100a   :  { %2749 = vadd.xlane.f32.xlu0 %v2748_v41  ;;  %v3423_v53 = vsub.f32 %v3419_v11, %v3422_v50  ;;  %4562 = vpow2.f32 %v3258_v52  ;;  %v3950_v41 = vld [vmem:[%s5453_s5 + $0x30] sm:$0xff] }
0x100b   :  { %v4458_v43 = vpack.c.bf16 %v3951_v42, %v3950_v41  ;;  %v3997_v41 = vld [vmem:[%s5455_s7 + $0x1] ss:$0 sm:$0xff] }
0x100c   :  { %v3424_v54 = vmul.f32 1.442695, %v3423_v53  ;;  %v4559_v49 = vpop.eup %4558 }
0x100d   :  { %v2928_v56 = vsel %vm331_vm3, %v4559_v49, 0.0  ;;  %v2588_v63 = vpop.permute.xlu0 %2587 }
0x100e   :  { %4564 = vpow2.f32 %v3424_v54 }
0x1010   :  { %v5301_v55 = vpop.eup %4560 }
0x1011   :  { %v3094_v58 = vsel %vm331_vm3, %v5301_v55, 0.0 }
0x1014   :  { %v5304_v57 = vpop.eup %4562 }
0x1015   :  { %v3260_v59 = vsel %vm331_vm3, %v5304_v57, 0.0 }
0x1017   :  { %3099 = vrot.lane.b32.xlu1 %v5214_v33, %s4751_s29 }
0x1018   :  { %v5310_v60 = vpop.eup %4564 }
0x1019   :  { %v3426_v61 = vsel %vm331_vm3, %v5310_v60, 0.0 }
0x1020   :  { %2933 = vrot.lane.b32.xlu0 %v5214_v33, %s4741_s17 }
0x103b   :  { %2929 = vadd.xlane.f32.xlu1 %v2928_v56 }
0x103f   :  { %3095 = vadd.xlane.f32.xlu0 %v3094_v58  ;;  %3261 = vadd.xlane.f32.xlu1 %v3260_v59 }
0x1043   :  { %3427 = vadd.xlane.f32.xlu1 %v3426_v61 }
0x1054   :  { %3431 = vrot.lane.b32.xlu1 %v5214_v33, %s4750_s14 }
0x1055   :  { %3265 = vrot.lane.b32.xlu0 %v5214_v33, %s4749_s0 }
0x108b   :  { %v2252_v19 = vpop.xlane.xlu1 %2251 }
0x108c   :  { %4566 = vrcp.f32 %v2252_v19  ;;  %v2418_v0 = vpop.xlane.xlu0 %2417  ;;  %v3994_v19 = vld [vmem:[%s5454_s6 + $0x1] ss:$0 sm:$0xff] }
0x108d   :  { %4568 = vrcp.f32 %v2418_v0 }
0x1093   :  { %v2584_v1 = vpop.xlane.xlu1 %2583 }
0x1094   :  { %4570 = vrcp.f32 %v2584_v1 }
0x1096   :  { %v4567_v2 = vpop.eup %4566 }
0x1097   :  { %v2254_v3 = vmul.f32 %v4567_v2, %v4551_v34  ;;  %v2750_v4 = vpop.xlane.xlu0 %2749  ;;  %v4569_v5 = vpop.eup %4568 }
0x1098   :  { %4572 = vrcp.f32 %v2750_v4  ;;  %v2420_v33 = vmul.f32 %v4569_v5, %v4553_v36  ;;  %v3100_v9 = vpop.permute.xlu1 %3099 }
0x1099   :  { %4289 = vmatmul.mubr.msk.f32.vlgmr.msra.gmra.mrb[26].mxu0 %vm331_vm3, %v2254_v3 }
0x109a   :  { %4297 = vmatpush3.msra.mxu0 %v5288_v17  ;;  %4298 = vmatprep.mubr.msk.f32.mxu0 %vm4740_vm2, %v4739_v16 }
0x109b   :  { %4306 = vmatprep.subr.mxu0 %v4739_v16  ;;  %v2934_v8 = vpop.permute.xlu0 %2933 }
0x109d   :  { %4299 = vmatmul.mubr.msk.f32.vlgmr.msra.gmra.mrb[28].mxu0 %vm331_vm3, %v2420_v33 }
0x109e   :  { %v4571_v6 = vpop.eup %4570  ;;  %4307 = vmatpush3.msra.mxu0 %v2588_v63  ;;  %4308 = vmatprep.mubr.msk.f32.mxu0 %vm4740_vm2, %v4739_v16 }
0x109f   :  { %v2586_v15 = vmul.f32 %v4571_v6, %v4555_v38  ;;  %4316 = vmatprep.subr.mxu0 %v4739_v16 }
0x10a1   :  { %4309 = vmatmul.mubr.msk.f32.vlgmr.msra.gmra.mrb[30].mxu0 %vm331_vm3, %v2586_v15 }
0x10a2   :  { %v4573_v14 = vpop.eup %4572  ;;  %4317 = vmatpush3.msra.mxu0 %v2754_v62  ;;  %4318 = vmatprep.mubr.msk.f32.mxu0 %vm4740_vm2, %v4739_v16 }
0x10a3   :  { %v2752_v7 = vmul.f32 %v4573_v14, %v5293_v40  ;;  %4326 = vmatprep.subr.mxu0 %v4739_v16 }
0x10a5   :  { %4319 = vmatmul.mubr.msk.f32.vlgmr.msra.gmra.mrb[32].mxu0 %vm331_vm3, %v2752_v7 }
0x10a6   :  { %4327 = vmatpush3.msra.mxu0 %v2934_v8  ;;  %4328 = vmatprep.mubr.msk.f32.mxu0 %vm4740_vm2, %v4739_v16 }
0x10a7   :  { %4336 = vmatprep.subr.mxu0 %v4739_v16 }
0x10c8   :  { %v2930_v10 = vpop.xlane.xlu1 %2929 }
0x10c9   :  { %4574 = vrcp.f32 %v2930_v10 }
0x10cc   :  { %v3096_v11 = vpop.xlane.xlu0 %3095  ;;  %v3262_v12 = vpop.xlane.xlu1 %3261 }
0x10cd   :  { %4576 = vrcp.f32 %v3096_v11 }
0x10ce   :  { %4578 = vrcp.f32 %v3262_v12 }
0x10d0   :  { %v3428_v13 = vpop.xlane.xlu1 %3427  ;;  %v3266_v24 = vpop.permute.xlu0 %3265 }
0x10d1   :  { %4580 = vrcp.f32 %v3428_v13 }
0x10d3   :  { %v4575_v17 = vpop.eup %4574 }
0x10d4   :  { %v2932_v18 = vmul.f32 %v4575_v17, %v4559_v49  ;;  %v3432_v27 = vpop.permute.xlu1 %3431  ;;  %v3955_v17 = vld [vmem:[%s5457_s9 + $0x28] sm:$0xff] }
0x10d6   :  { %4329 = vmatmul.mubr.msk.f32.vlgmr.msra.gmra.mrb[34].mxu0 %vm331_vm3, %v2932_v18 }
0x10d7   :  { %v4577_v20 = vpop.eup %4576  ;;  %4337 = vmatpush3.msra.mxu0 %v3100_v9  ;;  %4338 = vmatprep.mubr.msk.f32.mxu0 %vm4740_vm2, %v4739_v16 }
0x10d8   :  { %v3098_v22 = vmul.f32 %v4577_v20, %v5301_v55  ;;  %4346 = vmatprep.subr.mxu0 %v4739_v16  ;;  %v4579_v23 = vpop.eup %4578  ;;  %v3956_v20 = vld [vmem:[%s5457_s9 + $0x30] sm:$0xff] }
0x10d9   :  { %v3264_v25 = vmul.f32 %v4579_v23, %v5304_v57 }
0x10da   :  { %4339 = vmatmul.mubr.msk.f32.vlgmr.msra.gmra.mrb[36].mxu0 %vm331_vm3, %v3098_v22  ;;  %v3957_v22 = vld [vmem:[%s5457_s9 + $0x38] sm:$0xff] }
0x10db   :  { %4347 = vmatpush3.msra.mxu0 %v3266_v24  ;;  %4348 = vmatprep.mubr.msk.f32.mxu0 %vm4740_vm2, %v4739_v16  ;;  %v4581_v26 = vpop.eup %4580  ;;  %v4466_v23 = vpack.c.bf16 %v3957_v22, %v3956_v20  ;;  %v3958_v24 = vld [vmem:[%s5459_s11 + $0x40] sm:$0xff] }
0x10dc   :  { %4356 = vmatprep.subr.mxu0 %v4739_v16  ;;  %v3430_v30 = vmul.f32 %v4581_v26, %v5310_v60  ;;  %v3960_v26 = vld [vmem:[%s5459_s11 + $0x50] sm:$0xff]  ;;  %v4005_v20 = vld [vmem:[%s5461_s13 + $0x1] ss:$0 sm:$0xff] }
0x10de   :  { %4349 = vmatmul.mubr.msk.f32.vlgmr.msra.gmra.mrb[38].mxu0 %vm331_vm3, %v3264_v25  ;;  %v3959_v25 = vld [vmem:[%s5459_s11 + $0x48] sm:$0xff] }
0x10df   :  { %4357 = vmatpush3.msra.mxu0 %v3432_v27  ;;  %4358 = vmatprep.mubr.msk.f32.mxu0 %vm4740_vm2, %v4739_v16  ;;  %v3948_v16 = vld [vmem:[%s5453_s5 + $0x20] sm:$0xff]  ;;  %v4470_v27 = vpack.c.bf16 %v3959_v25, %v3958_v24  ;;  %v4006_v25 = vld [vmem:[#allocation10 + $0x1] ss:$0 sm:$0xff]  ;;  %s4753_s5 = smov [#allocation11]  }
0x10e0   :  { %v4454_v40 = vpack.c.bf16 %v3949_v39, %v3948_v16 }
0x10e2   :  { %4359 = vmatmul.mubr.msk.f32.vlgmr.msra.gmra.mrb[40].mxu0 %vm331_vm3, %v3430_v30  ;;  %4455 = vmatprep.subr.bf16.mxu1 %v4454_v40  ;;  %v3961_v30 = vld [vmem:[%s5459_s11 + $0x58] sm:$0xff] }
0x10e3   :  { %4457 = vmatpush3.bf16.msra.mxu1 %v4454_v40 }
0x10e4   :  { %4459 = vmatprep.subr.bf16.mxu1 %v4458_v43 }
0x10e7   :  { %4461 = vmatpush3.bf16.msra.mxu1 %v4458_v43  ;;  %v3998_v43 = vld [vmem:[#allocation5 + $0x1] ss:$0 sm:$0xff] }
0x10e8   :  { %4471 = vmatprep.subr.bf16.mxu1 %v4470_v27 }
0x116c   :  { %v2327_v31 = vpop.f32.mrb[26].mxu0 }
0x116d   :  { %v4290_v32 = vpop.f32.mrb[27].mxu0 }
0x116e   :  { %v3962_v32 = vld [vmem:[%s5459_s11 + $0x60] sm:$0xff] }
0x1170   :  { %v2493_v34 = vpop.f32.mrb[28].mxu0 }
0x1171   :  { %2830 = vrot.lane.b32.xlu0 %v2493_v34, %s4736_s18  ;;  %v4300_v35 = vpop.f32.mrb[29].mxu0  ;;  %v3963_v34 = vld [vmem:[%s5459_s11 + $0x68] sm:$0xff] }
0x1172   :  { %v4478_v35 = vpack.c.bf16 %v3963_v34, %v3962_v32 }
0x1174   :  { %v2659_v36 = vpop.f32.mrb[30].mxu0 }
0x1175   :  { %2834 = vrot.lane.b32.xlu1 %v2659_v36, %s4731_s28  ;;  %v4310_v21 = vpop.f32.mrb[31].mxu0 }
0x1178   :  { %v2825_v37 = vpop.f32.mrb[32].mxu0 }
0x1179   :  { %2838 = vrot.lane.b32.xlu1 %v2825_v37, %s5468_s4  ;;  %v4320_v38 = vpop.f32.mrb[33].mxu0 }
0x11a9   :  { %v3005_v44 = vpop.f32.mrb[34].mxu0 }
0x11aa   :  { %v4330_v45 = vpop.f32.mrb[35].mxu0 }
0x11ad   :  { %v3171_v46 = vpop.f32.mrb[36].mxu0 }
0x11ae   :  { %3508 = vrot.lane.b32.xlu0 %v3171_v46, %s4736_s18  ;;  %v4340_v47 = vpop.f32.mrb[37].mxu0 }
0x11b1   :  { %v3337_v48 = vpop.f32.mrb[38].mxu0 }
0x11b2   :  { %3512 = vrot.lane.b32.xlu0 %v3337_v48, %s4731_s28  ;;  %v4350_v50 = vpop.f32.mrb[39].mxu0  ;;  %s3889_s28 = sshll.u32 %s4753_s5, 4  ;;  %s3890_s28 = int_to_ptr.vmem [resolvable:$true] %s3889_s28 }
0x11b3   :  { %s4700_s6 = scalar_lea.vmem %s3890_s28, 32  ;;  %p4705_p13 = scmp.lt.s32.totalorder %s3890_s28, %s3890_s28 }
0x11b4   :  { %p4701_p12 = scmp.ne.s32.totalorder %s3890_s28, %s4700_s6  ;;  %p4706_p0 = scmp.lt.s32.totalorder %s4700_s6, %s4700_s6 }
0x11b5   :  { %v3503_v51 = vpop.f32.mrb[40].mxu0 }
0x11b6   :  { %3516 = vrot.lane.b32.xlu1 %v3503_v51, %s5468_s4  ;;  %v4360_v52 = vpop.f32.mrb[41].mxu0  ;;  %v3964_v51 = vld [vmem:[%s5459_s11 + $0x70] sm:$0xff]  ;;  %p4707_p1 = por %p4706_p0, %p4705_p13 }
0x11b7   :  { %v3965_v52 = vld [vmem:[%s5459_s11 + $0x78] sm:$0xff] }
0x11b8   :  { %p4708_p2 = pnand %p4707_p1, %p4701_p12 }
0x11e3   :  { %v2831_v53 = vpop.permute.xlu0 %2830 }
0x11e4   :  { %v2841_v49 = vsel %vm331_vm3, %v2327_v31, %v2831_v53  ;;  %v4474_v31 = vpack.c.bf16 %v3961_v30, %v3960_v26  ;;  %v4482_v53 = vpack.c.bf16 %v3965_v52, %v3964_v51 }
0x11e7   :  { %v2835_v54 = vpop.permute.xlu1 %2834 }
0x11e8   :  { %v2842_v55 = vsel %vm130_vm0, %v2841_v49, %v2835_v54  ;;  %v3999_v54 = vld [vmem:[#allocation7 + $0x1] ss:$0 sm:$0xff] }
0x11eb   :  { %v2839_v56 = vpop.permute.xlu1 %2838 }
0x11ec   :  { %v2843_v57 = vsel %vm1006_vm4, %v2842_v55, %v2839_v56 }
0x11ed   :  { %4369 = vmatprep.mubr.msk.f32.mxu1 %vm246_vm1, %v2843_v57 }
0x1220   :  { %v3509_v58 = vpop.permute.xlu0 %3508 }
0x1221   :  { %v3519_v60 = vsel %vm331_vm3, %v3005_v44, %v3509_v58 }
0x1224   :  { %v3513_v59 = vpop.permute.xlu0 %3512 }
0x1225   :  { %v3520_v61 = vsel %vm130_vm0, %v3519_v60, %v3513_v59  ;;  %v4002_v60 = vld [vmem:[#allocation8 + $0x1] ss:$0 sm:$0xff] }
0x1228   :  { %v3517_v62 = vpop.permute.xlu1 %3516 }
0x1229   :  { %v3521_v63 = vsel %vm1006_vm4, %v3520_v61, %v3517_v62 }
0x122a   :  { %4370 = vmatmul.mubr.msk.f32.vlgmr.msra.gmra.mrb[34].mxu1 %vm246_vm1, %v3521_v63 }
0x122b   :  { %4473 = vmatpush3.bf16.msra.mxu1 %v4470_v27 }
0x122c   :  { %4475 = vmatprep.subr.bf16.mxu1 %v4474_v31 }
0x122f   :  { %4477 = vmatpush3.bf16.msra.mxu1 %v4474_v31 }
0x1230   :  { %4479 = vmatprep.subr.bf16.mxu1 %v4478_v35 }
0x1233   :  { %4481 = vmatpush3.bf16.msra.mxu1 %v4478_v35 }
0x1234   :  { %4483 = vmatprep.subr.bf16.mxu1 %v4482_v53 }
0x1237   :  { %4485 = vmatpush3.bf16.msra.mxu1 %v4482_v53 }
0x12fd   :  { %v4371_v0 = vpop.f32.mrb[34].mxu1 }
0x12fe   :  { %v3606_v1 = vadd.f32 %v4371_v0, %v3994_v19  ;;  %v3600_v2 = vpop.f32.mrb[35].mxu1 }
0x12ff   :  { %v3601_v3 = vadd.f32 %v3994_v19, %v3600_v2 }
0x1300   :  { %v3610_v4 = vadd.f32 %v3606_v1, %v5189_v29 }
0x1301   :  { %v3609_v5 = vadd.f32 %v3601_v3, %v5187_v28  ;;  %v3954_v28 = vld [vmem:[%s5457_s9 + $0x20] sm:$0xff] }
0x1302   :  { %v3614_v33 = vsel %vm246_vm1, %v3610_v4, 0.0  ;;  %v4462_v18 = vpack.c.bf16 %v3955_v17, %v3954_v28 }
0x1303   :  { %3615 = vadd.xlane.f32.xlu1 %v3614_v33  ;;  %v3611_v6 = vsel %vm246_vm1, %v3609_v5, 0.0 }
0x1304   :  { %3612 = vadd.xlane.f32.xlu0 %v3611_v6  ;;  %4463 = vmatprep.subr.bf16.mxu0 %v4462_v18 }
0x1305   :  { %4465 = vmatpush3.bf16.msra.mxu0 %v4462_v18 }
0x1306   :  { %4467 = vmatprep.subr.bf16.mxu0 %v4466_v23 }
0x1309   :  { %4469 = vmatpush3.bf16.msra.mxu0 %v4466_v23 }
0x1390   :  { %v3616_v15 = vpop.xlane.xlu1 %3615 }
0x1391   :  { %v3618_v14 = vmul.f32 0.03125, %v3616_v15  ;;  %v3613_v7 = vpop.xlane.xlu0 %3612 }
0x1392   :  { %v3617_v8 = vmul.f32 0.03125, %v3613_v7 }
0x1393   :  { %v3620_v9 = vsub.f32 %v3610_v4, %v3618_v14 }
0x1394   :  { %v3619_v10 = vsub.f32 %v3609_v5, %v3617_v8 }
0x1395   :  { %v3622_v13 = vmul.f32 %v3620_v9, %v3620_v9 }
0x1396   :  { %v3621_v11 = vmul.f32 %v3619_v10, %v3619_v10 }
0x1397   :  { %v3626_v29 = vsel %vm246_vm1, %v3622_v13, 0.0 }
0x1398   :  { %v3623_v12 = vsel %vm246_vm1, %v3621_v11, 0.0 }
0x1399   :  { %3624 = vadd.xlane.f32.xlu0 %v3623_v12 }
0x139d   :  { %3627 = vadd.xlane.f32.xlu0 %v3626_v29 }
0x1426   :  { %v3625_v36 = vpop.xlane.xlu0 %3624 }
0x1427   :  { %v3629_v21 = vmul.f32 0.03125, %v3625_v36 }
0x1429   :  { %v3631_v37 = vadd.f32 1e-05, %v3629_v21 }
0x142a   :  { %v3628_v38 = vpop.xlane.xlu0 %3627 }
0x142b   :  { %4582 = vrsqrt.f32 %v3631_v37  ;;  %v3630_v16 = vmul.f32 0.03125, %v3628_v38 }
0x142d   :  { %v3632_v39 = vadd.f32 1e-05, %v3630_v16 }
0x142f   :  { %4584 = vrsqrt.f32 %v3632_v39 }
0x1435   :  { %v4583_v40 = vpop.eup %4582 }
0x1436   :  { %v3635_v42 = vmul.f32 %v4583_v40, %v3619_v10 }
0x1438   :  { %v3643_v44 = vmul.f32 %v3997_v41, %v3635_v42 }
0x1439   :  { %v4585_v45 = vpop.eup %4584 }
0x143a   :  { %v3636_v46 = vmul.f32 %v4585_v45, %v3620_v9  ;;  %v3651_v47 = vadd.f32 %v3998_v43, %v3643_v44 }
0x143c   :  { %v3644_v48 = vmul.f32 %v3997_v41, %v3636_v46  ;;  %4380 = vmatprep.mubr.msk.f32.mxu0 %vm246_vm1, %v3651_v47 }
0x143e   :  { %v3652_v50 = vadd.f32 %v3998_v43, %v3644_v48 }
0x1440   :  { %4381 = vmatmul.mubr.msk.f32.vlgmr.msra.gmra.mrb[42].mxu0 %vm246_vm1, %v3652_v50 }
0x1513   :  { %v4382_v49 = vpop.f32.mrb[42].mxu0 }
0x1514   :  { %v3737_v55 = vadd.f32 %v4382_v49, %v3999_v54  ;;  %v3731_v56 = vpop.f32.mrb[43].mxu0 }
0x1515   :  { %v3732_v57 = vadd.f32 %v3999_v54, %v3731_v56 }
0x1516   :  { %v3741_v59 = vmax.f32 %v3737_v55, 0.0 }
0x1517   :  { %v3740_v58 = vmax.f32 %v3732_v57, 0.0 }
0x1519   :  { %4399 = vmatprep.mubr.msk.f32.mxu1 %vm1913_vm5, %v3740_v58 }
0x151a   :  { %4400 = vmatmul.mubr.msk.f32.vlgmr.msra.gmra.mrb[36].mxu1 %vm1913_vm5, %v3741_v59 }
0x15ed   :  { %v4401_v61 = vpop.f32.mrb[36].mxu1 }
0x15ee   :  { %v3826_v62 = vadd.f32 %v4401_v61, %v4002_v60  ;;  %v3820_v63 = vpop.f32.mrb[37].mxu1 }
0x15ef   :  { %v3821_v19 = vadd.f32 %v4002_v60, %v3820_v63 }
0x15f0   :  { %v3830_v0 = vadd.f32 %v3826_v62, %v3652_v50 }
0x15f1   :  { %v3829_v1 = vadd.f32 %v3821_v19, %v3651_v47 }
0x15f2   :  { %v3834_v2 = vsel %vm246_vm1, %v3830_v0, 0.0 }
0x15f3   :  { %3835 = vadd.xlane.f32.xlu0 %v3834_v2  ;;  %v3831_v3 = vsel %vm246_vm1, %v3829_v1, 0.0 }
0x15f4   :  { %3832 = vadd.xlane.f32.xlu1 %v3831_v3 }
0x1680   :  { %v3836_v4 = vpop.xlane.xlu0 %3835 }
0x1681   :  { %v3838_v5 = vmul.f32 0.03125, %v3836_v4  ;;  %v3833_v33 = vpop.xlane.xlu1 %3832 }
0x1682   :  { %v3837_v6 = vmul.f32 0.03125, %v3833_v33 }
0x1683   :  { %v3840_v15 = vsub.f32 %v3830_v0, %v3838_v5 }
0x1684   :  { %v3839_v14 = vsub.f32 %v3829_v1, %v3837_v6 }
0x1685   :  { %v3842_v7 = vmul.f32 %v3840_v15, %v3840_v15 }
0x1686   :  { %v3841_v8 = vmul.f32 %v3839_v14, %v3839_v14 }
0x1687   :  { %v3846_v9 = vsel %vm246_vm1, %v3842_v7, 0.0 }
0x1688   :  { %3847 = vadd.xlane.f32.xlu0 %v3846_v9  ;;  %v3843_v10 = vsel %vm246_vm1, %v3841_v8, 0.0 }
0x1689   :  { %3844 = vadd.xlane.f32.xlu1 %v3843_v10 }
0x1715   :  { %v3848_v11 = vpop.xlane.xlu0 %3847 }
0x1716   :  { %v3850_v12 = vmul.f32 0.03125, %v3848_v11  ;;  %v3845_v13 = vpop.xlane.xlu1 %3844 }
0x1717   :  { %v3849_v29 = vmul.f32 0.03125, %v3845_v13 }
0x1718   :  { %v3852_v28 = vadd.f32 1e-05, %v3850_v12 }
0x1719   :  { %v3851_v17 = vadd.f32 1e-05, %v3849_v29 }
0x171a   :  { %4586 = vrsqrt.f32 %v3852_v28 }
0x171b   :  { %4588 = vrsqrt.f32 %v3851_v17 }
0x1724   :  { %v4587_v18 = vpop.eup %4586 }
0x1725   :  { %v4589_v22 = vpop.eup %4588  ;;  %v3856_v23 = vmul.f32 %v4587_v18, %v3840_v15 }
0x1726   :  { %v3855_v24 = vmul.f32 %v4589_v22, %v3839_v14 }
0x1727   :  { %v3864_v26 = vmul.f32 %v4005_v20, %v3856_v23 }
0x1728   :  { %v3863_v27 = vmul.f32 %v4005_v20, %v3855_v24 }
0x1729   :  { %v3872_v30 = vadd.f32 %v4006_v25, %v3864_v26 }
0x172a   :  { %v3871_v31 = vadd.f32 %v4006_v25, %v3863_v27 }
0x172b   :  { %v3877_v32 = vrot.slane %v3872_v30, 6 }
0x172c   :  { %v3874_v34 = vrot.slane %v3871_v31, 7 }
0x172e   :  { %v3880_v35 = vsel %vm3879_vm6, %v3874_v34, %v3877_v32 }
0x172f   :  { %3882 = vst.msk [vmem:[#allocation11] sm:$0x3] %vm3881_vm7, %v3880_v35 }
0x1730   :  { %4711 = shalt.err (!%p4708_p2)
}
0x1731   :  { %s5469_s0 = sld [smem:[#allocation16_spill]] }
0x1737   :  { %s4712_s14 = scalar_lea.hbm %s5469_s0, 32 }
0x1738   :  { %p4713_p3 = scmp.ne.s32.totalorder %s5469_s0, %s4712_s14  ;;  %p4716_p4 = scmp.lt.u32.totalorder %s4712_s14, %s5469_s0 }
0x173a   :  { %p4718_p5 = pnand %p4716_p4, %p4713_p3 }
0x173c   :  { %4721 = shalt.err (!%p4718_p5)
}
0x173d   :  { %3892 = dma.vmem_to_hbm [thread:$0]  %s3890_s28, 32, %s5469_s0, [#allocation4]  }
0x173e   :  { %4728 = dma.done.wait [#allocation4], 32  }
0x173f   :  { %4729 = vsyncadd [#allocation4], 4294967264 }
0x1740   :  { %3896 = vsyncpa [#allocation3], 1 }
0x1741   :  { %3897 = vsyncpa [#allocation6], 1 }
0x1742   :  { %3898 = vsyncpa [#allocation9], 1 }
0x1743   :  { %3899 = vsyncpa [#allocation4], 1 }

</bundles_post_ra>
